<compile_context>
chip_gen: v6e
topology: v6e:2x2x1
jax: 0.10.0
libtpu: 0.0.40
codegen_flags: <defaults>
</compile_context>

<pallas_src>
import jax
import jax.numpy as jnp
import numpy as np
from jax.experimental import pallas as pl
from jax.experimental.pallas import tpu as pltpu

BN_EPS = 1e-5
NEG_SLOPE = 0.01
WEIGHT_DTYPE = jnp.bfloat16   # flip to jnp.float32 for bit-faithful f32 weights
LANE = 128
LOGIT_PAD = LANE              # cls_out padded from 1 -> 128 output lanes

# Layer order shared by the kernel, the references, and prepare_params():
#  0: fc1(+bn1)   1: rb1_ds   2: rb1_fc(+bn)   3: rb2_ds   4: rb2_fc(+bn)
#  5: fc21|fc22 (fused, padded to 2*Z_PAD)     6: fc3(+bn3) 7: rb3_ds   8: rb3_fc(+bn)
#  9: rb4_ds     10: rb4_fc(+bn)  11: fc4
# 12: cls_fc1(+bn) 13: cls_rb_ds 14: cls_rb_fc1(+bn) 15: cls_rb_fc2(+bn) 16: cls_out (padded)
N_LAYERS = 17


def _round_up(n, m):
    return (n + m - 1) // m * m


def _shift_layout(weights):
    """Per-layer (offset, out_dim) into the concatenated shift row; offsets are 128-aligned."""
    offs, dims, off = [], [], 0
    for w in weights:
        out = int(w.shape[1])
        offs.append(off)
        dims.append(out)
        off += _round_up(out, LANE)
    return offs, dims, off


# ----------------------------------------------------------------------------
# Shared forward math (works on kernel refs or plain arrays: `ws[i][...]`).
# ----------------------------------------------------------------------------
def _forward_math(x, eps, ws, ss, z_pad):
    """ws[i]: (in,out) weight (BN scale folded, WEIGHT_DTYPE); ss[i]: (1,out) f32 shift.
    Returns f32 (recon, logits_pad, mu, logvar, z); mu/logvar/z have z_pad lanes,
    logits has LOGIT_PAD lanes (padded lanes are exact zeros)."""
    wd = ws[0].dtype

    def lin(h_cast, i, act=False):
        y = jnp.dot(h_cast, ws[i][...], preferred_element_type=jnp.float32) + ss[i]
        if act:
            y = jnp.where(y >= 0.0, y, NEG_SLOPE * y)   # LeakyReLU(0.01), f32
        return y

    # ---- VAE encoder (dropout = identity in eval) ----
    h = lin(x.astype(wd), 0, act=True)                         # fc1 + bn1 + leaky_relu
    hb = h.astype(wd); h = lin(hb, 2, act=True) + lin(hb, 1)   # resblock1
    hb = h.astype(wd); h = lin(hb, 4, act=True) + lin(hb, 3)   # resblock2
    ml = lin(h.astype(wd), 5)                                  # fused [mu | logvar], 2*z_pad lanes
    mu = ml[:, :z_pad]
    logvar = ml[:, z_pad:]

    # ---- reparameterize (padded lanes: mu=0, logvar=0, eps=0 -> z=0) ----
    z = mu + eps * jnp.exp(0.5 * logvar)
    zb = z.astype(wd)

    # ---- VAE decoder ----
    h = lin(zb, 6, act=True)                                   # fc3 + bn3 + leaky_relu
    hb = h.astype(wd); h = lin(hb, 8, act=True) + lin(hb, 7)   # resblock3
    hb = h.astype(wd); h = lin(hb, 10, act=True) + lin(hb, 9)  # resblock4
    recon = lin(h.astype(wd), 11)                              # fc4

    # ---- ResDNN classifier on z ----
    c = lin(zb, 12, act=True)                                  # cls fc1 + bn1 + act
    cb = c.astype(wd)
    ident = lin(cb, 13)                                        # downsample(identity)
    c = lin(cb, 14, act=True)                                  # rb fc1 + bn1 + act
    c = lin(c.astype(wd), 15, act=True) + ident                # rb fc2 + bn2 + act, then residual
    logits = lin(c.astype(wd), 16)                             # fc_out (padded to 128 lanes)

    return recon, logits, mu, logvar, z


# ----------------------------------------------------------------------------
# Fused Pallas kernel (one batch tile per grid step, weights resident)
# ----------------------------------------------------------------------------
def _make_kernel(offsets, out_dims, z_pad):
    def kernel(x_ref, eps_ref, sh_ref, *rest):
        w_refs = rest[:N_LAYERS]
        recon_ref = rest[N_LAYERS]
        packed_ref = rest[N_LAYERS + 1]

        ss = [sh_ref[:, offsets[i]:offsets[i] + out_dims[i]] for i in range(N_LAYERS)]
        recon, logits, mu, logvar, z = _forward_math(
            x_ref[...], eps_ref[...], w_refs, ss, z_pad)

        recon_ref[...] = recon
        # Lane-dense packed output: [logits(128) | mu(z_pad) | logvar(z_pad) | z(z_pad)].
        packed_ref[:, 0:LOGIT_PAD] = logits
        packed_ref[:, LOGIT_PAD:LOGIT_PAD + z_pad] = mu
        packed_ref[:, LOGIT_PAD + z_pad:LOGIT_PAD + 2 * z_pad] = logvar
        packed_ref[:, LOGIT_PAD + 2 * z_pad:LOGIT_PAD + 3 * z_pad] = z
    return kernel


@jax.jit
def cvae_resdnn_forward(x, eps, params):
    """Returns (recon_x, class_logits, mu, logvar, z) — matches CVAEResDNN.forward."""
    weights = params["weights"]
    shifts = params["shifts"]
    batch, input_dim = x.shape
    z_dim = eps.shape[1]
    z_pad = int(weights[5].shape[1]) // 2
    pack_w = LOGIT_PAD + 3 * z_pad
    offsets, out_dims, _ = _shift_layout(weights)

    # --- batch tiling (grid axis), tile capped at 128 rows ---
    tb = min(128, _round_up(batch, 8))
    pb = _round_up(batch, tb)
    x_p = jnp.pad(x, ((0, pb - batch), (0, 0)))
    eps_p = jnp.pad(eps, ((0, pb - batch), (0, z_pad - z_dim)))   # zero pad lanes -> z pads stay 0
    grid = (pb // tb,)

    # --- specs: activations/outputs tiled over batch; weights + shifts grid-resident ---
    row_spec = lambda d: pl.BlockSpec((tb, d), lambda i: (i, 0))
    const_spec = lambda shp: pl.BlockSpec(shp, lambda i: (0, 0))
    in_specs = ([row_spec(input_dim), row_spec(z_pad), const_spec(tuple(shifts.shape))]
                + [const_spec(tuple(w.shape)) for w in weights])
    out_specs = (row_spec(input_dim), row_spec(pack_w))
    out_shape = (jax.ShapeDtypeStruct((pb, input_dim), jnp.float32),
                 jax.ShapeDtypeStruct((pb, pack_w), jnp.float32))

    # --- compiler params + cost hint ---
    weight_bytes = sum(int(np.prod(w.shape)) * jnp.dtype(w.dtype).itemsize for w in weights)
    shift_bytes = 8 * int(shifts.shape[1]) * 4          # 8-sublane VMEM padding
    max_feat = max(out_dims + [input_dim, z_pad])
    est_vmem = (2 * weight_bytes + shift_bytes
                + 4 * tb * (input_dim + z_pad + pack_w) * 4
                + 8 * tb * max_feat * 4)
    vmem_limit = int(min(max(est_vmem, 32 << 20), 64 << 20))
    flops = 2 * pb * sum(int(w.shape[0]) * int(w.shape[1]) for w in weights)
    bytes_accessed = weight_bytes + shift_bytes + pb * (2 * input_dim + z_pad + pack_w) * 4

    recon_p, packed = pl.pallas_call(
        _make_kernel(tuple(offsets), tuple(out_dims), z_pad),
        grid=grid,
        in_specs=in_specs,
        out_specs=out_specs,
        out_shape=out_shape,
        compiler_params=pltpu.CompilerParams(
            dimension_semantics=("parallel",),
            vmem_limit_bytes=vmem_limit),
        cost_estimate=pl.CostEstimate(
            flops=int(flops),
            transcendentals=int(pb * z_pad),
            bytes_accessed=int(bytes_accessed)),
    )(x_p, eps_p, shifts, *weights)

    recon = recon_p[:batch]
    logits = packed[:batch, 0:1]
    mu = packed[:batch, LOGIT_PAD:LOGIT_PAD + z_dim]
    logvar = packed[:batch, LOGIT_PAD + z_pad:LOGIT_PAD + z_pad + z_dim]
    z = packed[:batch, LOGIT_PAD + 2 * z_pad:LOGIT_PAD + 2 * z_pad + z_dim]
    return recon, logits, mu, logvar, z


# ----------------------------------------------------------------------------
# One-time parameter preparation (outside the per-forward path)
# ----------------------------------------------------------------------------
def prepare_params(p, weight_dtype=WEIGHT_DTYPE):
    """Fold bias + eval-mode BN into (weight, shift); pre-transpose weights to (in, out);
    fuse + 128-pad fc21/fc22 and cls_out; pad z-consuming inputs to Z_PAD; cast weights to
    weight_dtype; concat all shifts into a single (1, total) f32 row with 128-aligned offsets."""
    z_dim = int(p["fc21_w"].shape[0])
    z_pad = _round_up(z_dim, LANE)

    def prep(w, b, bn=None):
        w = jnp.asarray(w, jnp.float32)
        b = jnp.asarray(b, jnp.float32)
        if bn is not None:
            g, be, m, v = [jnp.asarray(t, jnp.float32) for t in bn]
            s = g * jax.lax.rsqrt(v + BN_EPS)
            shift = (b - m) * s + be
        else:
            s = jnp.ones_like(b)
            shift = b
        wt = (w.T * s[None, :]).astype(weight_dtype)      # (in, out) with BN scale folded
        return wt, shift.astype(jnp.float32)

    def pad_out(w, b, new_out):   # pad PyTorch-layout (out, in) rows + bias with zeros
        out, inn = w.shape
        w2 = jnp.zeros((new_out, inn), w.dtype).at[:out].set(w)
        b2 = jnp.zeros((new_out,), b.dtype).at[:out].set(b)
        return w2, b2

    def pad_in(w, new_in):        # pad PyTorch-layout (out, in) columns with zeros
        out, inn = w.shape
        return jnp.zeros((out, new_in), w.dtype).at[:, :inn].set(w)

    # Fused + padded [mu | logvar] head; 128-aligned z everywhere downstream.
    w21, b21 = pad_out(p["fc21_w"], p["fc21_b"], z_pad)
    w22, b22 = pad_out(p["fc22_w"], p["fc22_b"], z_pad)
    w2122 = jnp.concatenate([w21, w22], axis=0)
    b2122 = jnp.concatenate([b21, b22], axis=0)
    fc3_w = pad_in(p["fc3_w"], z_pad)
    cls_fc1_w = pad_in(p["cls_fc1_w"], z_pad)
    cls_out_w, cls_out_b = pad_out(p["cls_out_w"], p["cls_out_b"], LOGIT_PAD)

    layers = [
        (p["fc1_w"], p["fc1_b"], p["bn1"]),
        (p["rb1_ds_w"], p["rb1_ds_b"], None),
        (p["rb1_fc_w"], p["rb1_fc_b"], p["rb1_bn"]),
        (p["rb2_ds_w"], p["rb2_ds_b"], None),
        (p["rb2_fc_w"], p["rb2_fc_b"], p["rb2_bn"]),
        (w2122, b2122, None),
        (fc3_w, p["fc3_b"], p["bn3"]),
        (p["rb3_ds_w"], p["rb3_ds_b"], None),
        (p["rb3_fc_w"], p["rb3_fc_b"], p["rb3_bn"]),
        (p["rb4_ds_w"], p["rb4_ds_b"], None),
        (p["rb4_fc_w"], p["rb4_fc_b"], p["rb4_bn"]),
        (p["fc4_w"], p["fc4_b"], None),
        (cls_fc1_w, p["cls_fc1_b"], p["cls_bn1"]),
        (p["cls_rb_ds_w"], p["cls_rb_ds_b"], None),
        (p["cls_rb_fc1_w"], p["cls_rb_fc1_b"], p["cls_rb_bn1"]),
        (p["cls_rb_fc2_w"], p["cls_rb_fc2_b"], p["cls_rb_bn2"]),
        (cls_out_w, cls_out_b, None),
    ]
    assert len(layers) == N_LAYERS
    weights, shift_chunks = [], []
    for w, b, bn in layers:
        wt, sh = prep(w, b, bn)
        weights.append(wt)
        out = int(wt.shape[1])
        shift_chunks.append(jnp.zeros((_round_up(out, LANE),), jnp.float32).at[:out].set(sh))
    shifts = jnp.concatenate(shift_chunks).reshape(1, -1)
    return {"weights": weights, "shifts": shifts}


# ----------------------------------------------------------------------------
# References
# ----------------------------------------------------------------------------
def ref_forward_prepared(x, eps, params, z_dim):
    """Pure-JAX reference using the SAME prepared params / rounding points as the kernel."""
    weights, shifts = params["weights"], params["shifts"]
    z_pad = int(weights[5].shape[1]) // 2
    offs, dims, _ = _shift_layout(weights)
    ss = [shifts[:, offs[i]:offs[i] + dims[i]] for i in range(N_LAYERS)]
    eps_p = jnp.pad(eps, ((0, 0), (0, z_pad - z_dim)))
    recon, logits, mu, logvar, z = _forward_math(x, eps_p, weights, ss, z_pad)
    return recon, logits[:, :1], mu[:, :z_dim], logvar[:, :z_dim], z[:, :z_dim]


def ref_forward_raw(x, eps, p):
    """f32 PyTorch-semantics reference on RAW params (separate BN, no fold/pad/bf16)."""
    def lin(h, w, b): return h @ jnp.asarray(w).T + jnp.asarray(b)
    def bn(h, bp):
        g, be, m, v = bp
        return (h - m) * (g * jax.lax.rsqrt(v + BN_EPS)) + be
    def lrelu(h): return jnp.where(h >= 0.0, h, NEG_SLOPE * h)
    def resblock(h, fw, fb, bnp, dw, db):
        return lrelu(bn(lin(h, fw, fb), bnp)) + lin(h, dw, db)

    h = lrelu(bn(lin(x, p["fc1_w"], p["fc1_b"]), p["bn1"]))
    h = resblock(h, p["rb1_fc_w"], p["rb1_fc_b"], p["rb1_bn"], p["rb1_ds_w"], p["rb1_ds_b"])
    h = resblock(h, p["rb2_fc_w"], p["rb2_fc_b"], p["rb2_bn"], p["rb2_ds_w"], p["rb2_ds_b"])
    mu = lin(h, p["fc21_w"], p["fc21_b"])
    logvar = lin(h, p["fc22_w"], p["fc22_b"])
    z = mu + eps * jnp.exp(0.5 * logvar)
    h = lrelu(bn(lin(z, p["fc3_w"], p["fc3_b"]), p["bn3"]))
    h = resblock(h, p["rb3_fc_w"], p["rb3_fc_b"], p["rb3_bn"], p["rb3_ds_w"], p["rb3_ds_b"])
    h = resblock(h, p["rb4_fc_w"], p["rb4_fc_b"], p["rb4_bn"], p["rb4_ds_w"], p["rb4_ds_b"])
    recon = lin(h, p["fc4_w"], p["fc4_b"])
    c = lrelu(bn(lin(z, p["cls_fc1_w"], p["cls_fc1_b"]), p["cls_bn1"]))
    ident = lin(c, p["cls_rb_ds_w"], p["cls_rb_ds_b"])
    c = lrelu(bn(lin(c, p["cls_rb_fc1_w"], p["cls_rb_fc1_b"]), p["cls_rb_bn1"]))
    c = lrelu(bn(lin(c, p["cls_rb_fc2_w"], p["cls_rb_fc2_b"]), p["cls_rb_bn2"])) + ident
    logits = lin(c, p["cls_out_w"], p["cls_out_b"])
    return recon, logits, mu, logvar, z


# ----------------------------------------------------------------------------
# Deterministic PyTorch-layout parameter initialization
# ----------------------------------------------------------------------------
def init_params(key, input_dim, hidden_dim, z_dim, layer_dims):
    keys = iter(jax.random.split(key, 128))

    def lin_p(out_d, in_d):
        w = jax.random.normal(next(keys), (out_d, in_d), jnp.float32) / jnp.sqrt(float(in_d))
        b = 0.01 * jax.random.normal(next(keys), (out_d,), jnp.float32)
        return w, b

    def bn_p(d):
        gamma = 1.0 + 0.1 * jax.random.normal(next(keys), (d,), jnp.float32)
        beta = 0.1 * jax.random.normal(next(keys), (d,), jnp.float32)
        mean = 0.05 * jax.random.normal(next(keys), (d,), jnp.float32)
        var = 0.5 + jax.random.uniform(next(keys), (d,), jnp.float32)
        return (gamma, beta, mean, var)

    h, h2, h4 = hidden_dim, hidden_dim // 2, hidden_dim // 4
    l0, l1 = layer_dims
    p = {}
    # VAE encoder
    p["fc1_w"], p["fc1_b"] = lin_p(h, input_dim); p["bn1"] = bn_p(h)
    p["rb1_fc_w"], p["rb1_fc_b"] = lin_p(h2, h); p["rb1_bn"] = bn_p(h2)
    p["rb1_ds_w"], p["rb1_ds_b"] = lin_p(h2, h)
    p["rb2_fc_w"], p["rb2_fc_b"] = lin_p(h4, h2); p["rb2_bn"] = bn_p(h4)
    p["rb2_ds_w"], p["rb2_ds_b"] = lin_p(h4, h2)
    p["fc21_w"], p["fc21_b"] = lin_p(z_dim, h4)
    p["fc22_w"], p["fc22_b"] = lin_p(z_dim, h4)
    # VAE decoder
    p["fc3_w"], p["fc3_b"] = lin_p(h4, z_dim); p["bn3"] = bn_p(h4)
    p["rb3_fc_w"], p["rb3_fc_b"] = lin_p(h2, h4); p["rb3_bn"] = bn_p(h2)
    p["rb3_ds_w"], p["rb3_ds_b"] = lin_p(h2, h4)
    p["rb4_fc_w"], p["rb4_fc_b"] = lin_p(h, h2); p["rb4_bn"] = bn_p(h)
    p["rb4_ds_w"], p["rb4_ds_b"] = lin_p(h, h2)
    p["fc4_w"], p["fc4_b"] = lin_p(input_dim, h)
    # ResDNN classifier on z: fc1 -> 1 ResBlock -> fc_out
    p["cls_fc1_w"], p["cls_fc1_b"] = lin_p(l0, z_dim); p["cls_bn1"] = bn_p(l0)
    p["cls_rb_fc1_w"], p["cls_rb_fc1_b"] = lin_p(l1, l0); p["cls_rb_bn1"] = bn_p(l1)
    p["cls_rb_fc2_w"], p["cls_rb_fc2_b"] = lin_p(l1, l1); p["cls_rb_bn2"] = bn_p(l1)
    p["cls_rb_ds_w"], p["cls_rb_ds_b"] = lin_p(l1, l0)
    p["cls_out_w"], p["cls_out_b"] = lin_p(1, l1)
    return p


# ----------------------------------------------------------------------------
if __name__ == "__main__":
    # Small shapes consistent with the module structure.
    # (Original module: input_dim=2560, hidden_dim=1280, z_dim=100, classifier layer_dims=[1344, 64].)
    BATCH = 8
    INPUT_DIM = 256
    HIDDEN_DIM = 128
    Z_DIM = 32
    LAYER_DIMS = (96, 64)   # num_blocks=1 -> [layer_0_dim, layer_1_dim]

    key = jax.random.PRNGKey(0)
    k_x, k_eps, k_p = jax.random.split(key, 3)

    x = jax.random.normal(k_x, (BATCH, INPUT_DIM), jnp.float32)
    eps = jax.random.normal(k_eps, (BATCH, Z_DIM), jnp.float32)   # deterministic reparam noise
    raw_params = init_params(k_p, INPUT_DIM, HIDDEN_DIM, Z_DIM, LAYER_DIMS)
    params = prepare_params(raw_params)   # one-time: transpose + BN fold + pad + bf16 cast

    outs = jax.block_until_ready(cvae_resdnn_forward(x, eps, params))
    recon_x, class_logits, mu, logvar, z = outs

    assert recon_x.shape == (BATCH, INPUT_DIM)
    assert class_logits.shape == (BATCH, 1)
    assert mu.shape == (BATCH, Z_DIM) and logvar.shape == (BATCH, Z_DIM) and z.shape == (BATCH, Z_DIM)

    # (1) Exact-math check: same prepared params, same rounding points, pure JAX.
    ref1 = ref_forward_prepared(x, eps, params, Z_DIM)
    for got, want in zip(outs, ref1):
        np.testing.assert_allclose(np.asarray(got), np.asarray(want), rtol=1e-3, atol=1e-3)

    # (2) Structural check vs raw f32 PyTorch-semantics math (separate BN, no fold/pad/bf16).
    #     Loose tolerance accounts only for the intentional bf16 weight cast.
    ref2 = ref_forward_raw(x, eps, raw_params)
    for got, want in zip(outs, ref2):
        np.testing.assert_allclose(np.asarray(got), np.asarray(want), rtol=0.1, atol=0.1)

    print("KERNEL_OK")
</pallas_src>

<mosaic_0001>
module attributes {stable_mosaic.version = 11 : i64} {
  func.func @kernel(%arg0: i32, %arg1: memref<8x256xf32, #tpu.memory_space<vmem>>, %arg2: memref<8x128xf32, #tpu.memory_space<vmem>>, %arg3: memref<1x2432xf32, #tpu.memory_space<vmem>>, %arg4: memref<256x128xbf16, #tpu.memory_space<vmem>>, %arg5: memref<128x64xbf16, #tpu.memory_space<vmem>>, %arg6: memref<128x64xbf16, #tpu.memory_space<vmem>>, %arg7: memref<64x32xbf16, #tpu.memory_space<vmem>>, %arg8: memref<64x32xbf16, #tpu.memory_space<vmem>>, %arg9: memref<32x256xbf16, #tpu.memory_space<vmem>>, %arg10: memref<128x32xbf16, #tpu.memory_space<vmem>>, %arg11: memref<32x64xbf16, #tpu.memory_space<vmem>>, %arg12: memref<32x64xbf16, #tpu.memory_space<vmem>>, %arg13: memref<64x128xbf16, #tpu.memory_space<vmem>>, %arg14: memref<64x128xbf16, #tpu.memory_space<vmem>>, %arg15: memref<128x256xbf16, #tpu.memory_space<vmem>>, %arg16: memref<128x96xbf16, #tpu.memory_space<vmem>>, %arg17: memref<96x64xbf16, #tpu.memory_space<vmem>>, %arg18: memref<96x64xbf16, #tpu.memory_space<vmem>>, %arg19: memref<64x64xbf16, #tpu.memory_space<vmem>>, %arg20: memref<64x128xbf16, #tpu.memory_space<vmem>>, %arg21: memref<8x256xf32, #tpu.memory_space<vmem>>, %arg22: memref<8x512xf32, #tpu.memory_space<vmem>>) attributes {dimension_semantics = [#tpu.dimension_semantics<parallel>], iteration_bounds = array<i64: 1>, scalar_prefetch = 0 : i64, scratch_operands = 0 : i64, tpu.core_type = #tpu.core_type<tc>, window_params = [{transform_indices = @transform_0, window_bounds = array<i64: 8, 256>}, {transform_indices = @transform_1, window_bounds = array<i64: 8, 128>}, {pipeline_mode = #tpu.pipeline_mode<synchronous>, transform_indices = @transform_2, window_bounds = array<i64: 1, 2432>}, {pipeline_mode = #tpu.pipeline_mode<synchronous>, transform_indices = @transform_3, window_bounds = array<i64: 256, 128>}, {pipeline_mode = #tpu.pipeline_mode<synchronous>, transform_indices = @transform_4, window_bounds = array<i64: 128, 64>}, {pipeline_mode = #tpu.pipeline_mode<synchronous>, transform_indices = @transform_5, window_bounds = array<i64: 128, 64>}, {pipeline_mode = #tpu.pipeline_mode<synchronous>, transform_indices = @transform_6, window_bounds = array<i64: 64, 32>}, {pipeline_mode = #tpu.pipeline_mode<synchronous>, transform_indices = @transform_7, window_bounds = array<i64: 64, 32>}, {pipeline_mode = #tpu.pipeline_mode<synchronous>, transform_indices = @transform_8, window_bounds = array<i64: 32, 256>}, {pipeline_mode = #tpu.pipeline_mode<synchronous>, transform_indices = @transform_9, window_bounds = array<i64: 128, 32>}, {pipeline_mode = #tpu.pipeline_mode<synchronous>, transform_indices = @transform_10, window_bounds = array<i64: 32, 64>}, {pipeline_mode = #tpu.pipeline_mode<synchronous>, transform_indices = @transform_11, window_bounds = array<i64: 32, 64>}, {pipeline_mode = #tpu.pipeline_mode<synchronous>, transform_indices = @transform_12, window_bounds = array<i64: 64, 128>}, {pipeline_mode = #tpu.pipeline_mode<synchronous>, transform_indices = @transform_13, window_bounds = array<i64: 64, 128>}, {pipeline_mode = #tpu.pipeline_mode<synchronous>, transform_indices = @transform_14, window_bounds = array<i64: 128, 256>}, {pipeline_mode = #tpu.pipeline_mode<synchronous>, transform_indices = @transform_15, window_bounds = array<i64: 128, 96>}, {pipeline_mode = #tpu.pipeline_mode<synchronous>, transform_indices = @transform_16, window_bounds = array<i64: 96, 64>}, {pipeline_mode = #tpu.pipeline_mode<synchronous>, transform_indices = @transform_17, window_bounds = array<i64: 96, 64>}, {pipeline_mode = #tpu.pipeline_mode<synchronous>, transform_indices = @transform_18, window_bounds = array<i64: 64, 64>}, {pipeline_mode = #tpu.pipeline_mode<synchronous>, transform_indices = @transform_19, window_bounds = array<i64: 64, 128>}, {transform_indices = @transform_20, window_bounds = array<i64: 8, 256>}, {transform_indices = @transform_21, window_bounds = array<i64: 8, 512>}]} {
    %c0 = arith.constant 0 : index
    %c0_0 = arith.constant 0 : index
    %0 = vector.load %arg3[%c0, %c0_0] : memref<1x2432xf32, #tpu.memory_space<vmem>>, vector<1x128xf32>
    %c0_1 = arith.constant 0 : index
    %c128 = arith.constant 128 : index
    %1 = vector.load %arg3[%c0_1, %c128] : memref<1x2432xf32, #tpu.memory_space<vmem>>, vector<1x64xf32>
    %c0_2 = arith.constant 0 : index
    %c256 = arith.constant 256 : index
    %2 = vector.load %arg3[%c0_2, %c256] : memref<1x2432xf32, #tpu.memory_space<vmem>>, vector<1x64xf32>
    %c0_3 = arith.constant 0 : index
    %c384 = arith.constant 384 : index
    %3 = vector.load %arg3[%c0_3, %c384] : memref<1x2432xf32, #tpu.memory_space<vmem>>, vector<1x32xf32>
    %c0_4 = arith.constant 0 : index
    %c512 = arith.constant 512 : index
    %4 = vector.load %arg3[%c0_4, %c512] : memref<1x2432xf32, #tpu.memory_space<vmem>>, vector<1x32xf32>
    %c0_5 = arith.constant 0 : index
    %c640 = arith.constant 640 : index
    %5 = vector.load %arg3[%c0_5, %c640] : memref<1x2432xf32, #tpu.memory_space<vmem>>, vector<1x256xf32>
    %c0_6 = arith.constant 0 : index
    %c896 = arith.constant 896 : index
    %6 = vector.load %arg3[%c0_6, %c896] : memref<1x2432xf32, #tpu.memory_space<vmem>>, vector<1x32xf32>
    %c0_7 = arith.constant 0 : index
    %c1024 = arith.constant 1024 : index
    %7 = vector.load %arg3[%c0_7, %c1024] : memref<1x2432xf32, #tpu.memory_space<vmem>>, vector<1x64xf32>
    %c0_8 = arith.constant 0 : index
    %c1152 = arith.constant 1152 : index
    %8 = vector.load %arg3[%c0_8, %c1152] : memref<1x2432xf32, #tpu.memory_space<vmem>>, vector<1x64xf32>
    %c0_9 = arith.constant 0 : index
    %c1280 = arith.constant 1280 : index
    %9 = vector.load %arg3[%c0_9, %c1280] : memref<1x2432xf32, #tpu.memory_space<vmem>>, vector<1x128xf32>
    %c0_10 = arith.constant 0 : index
    %c1408 = arith.constant 1408 : index
    %10 = vector.load %arg3[%c0_10, %c1408] : memref<1x2432xf32, #tpu.memory_space<vmem>>, vector<1x128xf32>
    %c0_11 = arith.constant 0 : index
    %c1536 = arith.constant 1536 : index
    %11 = vector.load %arg3[%c0_11, %c1536] : memref<1x2432xf32, #tpu.memory_space<vmem>>, vector<1x256xf32>
    %c0_12 = arith.constant 0 : index
    %c1792 = arith.constant 1792 : index
    %12 = vector.load %arg3[%c0_12, %c1792] : memref<1x2432xf32, #tpu.memory_space<vmem>>, vector<1x96xf32>
    %c0_13 = arith.constant 0 : index
    %c1920 = arith.constant 1920 : index
    %13 = vector.load %arg3[%c0_13, %c1920] : memref<1x2432xf32, #tpu.memory_space<vmem>>, vector<1x64xf32>
    %c0_14 = arith.constant 0 : index
    %c2048 = arith.constant 2048 : index
    %14 = vector.load %arg3[%c0_14, %c2048] : memref<1x2432xf32, #tpu.memory_space<vmem>>, vector<1x64xf32>
    %c0_15 = arith.constant 0 : index
    %c2176 = arith.constant 2176 : index
    %15 = vector.load %arg3[%c0_15, %c2176] : memref<1x2432xf32, #tpu.memory_space<vmem>>, vector<1x64xf32>
    %c0_16 = arith.constant 0 : index
    %c2304 = arith.constant 2304 : index
    %16 = vector.load %arg3[%c0_16, %c2304] : memref<1x2432xf32, #tpu.memory_space<vmem>>, vector<1x128xf32>
    %c0_17 = arith.constant 0 : index
    %c0_18 = arith.constant 0 : index
    %17 = vector.load %arg1[%c0_17, %c0_18] : memref<8x256xf32, #tpu.memory_space<vmem>>, vector<8x256xf32>
    %c0_19 = arith.constant 0 : index
    %c0_20 = arith.constant 0 : index
    %18 = vector.load %arg2[%c0_19, %c0_20] : memref<8x128xf32, #tpu.memory_space<vmem>>, vector<8x128xf32>
    %19 = arith.truncf %17 : vector<8x256xf32> to vector<8x256xbf16>
    %c0_21 = arith.constant 0 : index
    %c0_22 = arith.constant 0 : index
    %20 = vector.load %arg4[%c0_21, %c0_22] : memref<256x128xbf16, #tpu.memory_space<vmem>>, vector<256x128xbf16>
    %cst = arith.constant dense<0.000000e+00> : vector<8x128xf32>
    %21 = tpu.matmul %19, %20, %cst {dimension_numbers = #tpu.dot_dimension_numbers<[1], [0], [0], [1], [0, 0, 1, 1], [], []>} : vector<8x256xbf16>, vector<256x128xbf16>, vector<8x128xf32> -> vector<8x128xf32>
    %22 = vector.broadcast %0 : vector<1x128xf32> to vector<8x128xf32>
    %23 = arith.addf %21, %22 : vector<8x128xf32>
    %cst_23 = arith.constant 0.000000e+00 : f32
    %24 = vector.broadcast %cst_23 : f32 to vector<8x128xf32>
    %25 = arith.cmpf oge, %23, %24 : vector<8x128xf32>
    %cst_24 = arith.constant 0.00999999977 : f32
    %26 = vector.broadcast %cst_24 : f32 to vector<8x128xf32>
    %27 = arith.mulf %26, %23 : vector<8x128xf32>
    %28 = arith.select %25, %23, %27 : vector<8x128xi1>, vector<8x128xf32>
    %29 = arith.truncf %28 : vector<8x128xf32> to vector<8x128xbf16>
    %c0_25 = arith.constant 0 : index
    %c0_26 = arith.constant 0 : index
    %30 = vector.load %arg6[%c0_25, %c0_26] : memref<128x64xbf16, #tpu.memory_space<vmem>>, vector<128x64xbf16>
    %cst_27 = arith.constant dense<0.000000e+00> : vector<8x64xf32>
    %31 = tpu.matmul %29, %30, %cst_27 {dimension_numbers = #tpu.dot_dimension_numbers<[1], [0], [0], [1], [0, 0, 1, 1], [], []>} : vector<8x128xbf16>, vector<128x64xbf16>, vector<8x64xf32> -> vector<8x64xf32>
    %32 = vector.broadcast %2 : vector<1x64xf32> to vector<8x64xf32>
    %33 = arith.addf %31, %32 : vector<8x64xf32>
    %cst_28 = arith.constant 0.000000e+00 : f32
    %34 = vector.broadcast %cst_28 : f32 to vector<8x64xf32>
    %35 = arith.cmpf oge, %33, %34 : vector<8x64xf32>
    %cst_29 = arith.constant 0.00999999977 : f32
    %36 = vector.broadcast %cst_29 : f32 to vector<8x64xf32>
    %37 = arith.mulf %36, %33 : vector<8x64xf32>
    %38 = arith.select %35, %33, %37 : vector<8x64xi1>, vector<8x64xf32>
    %c0_30 = arith.constant 0 : index
    %c0_31 = arith.constant 0 : index
    %39 = vector.load %arg5[%c0_30, %c0_31] : memref<128x64xbf16, #tpu.memory_space<vmem>>, vector<128x64xbf16>
    %cst_32 = arith.constant dense<0.000000e+00> : vector<8x64xf32>
    %40 = tpu.matmul %29, %39, %cst_32 {dimension_numbers = #tpu.dot_dimension_numbers<[1], [0], [0], [1], [0, 0, 1, 1], [], []>} : vector<8x128xbf16>, vector<128x64xbf16>, vector<8x64xf32> -> vector<8x64xf32>
    %41 = vector.broadcast %1 : vector<1x64xf32> to vector<8x64xf32>
    %42 = arith.addf %40, %41 : vector<8x64xf32>
    %43 = arith.addf %38, %42 : vector<8x64xf32>
    %44 = arith.truncf %43 : vector<8x64xf32> to vector<8x64xbf16>
    %c0_33 = arith.constant 0 : index
    %c0_34 = arith.constant 0 : index
    %45 = vector.load %arg8[%c0_33, %c0_34] : memref<64x32xbf16, #tpu.memory_space<vmem>>, vector<64x32xbf16>
    %cst_35 = arith.constant dense<0.000000e+00> : vector<8x32xf32>
    %46 = tpu.matmul %44, %45, %cst_35 {dimension_numbers = #tpu.dot_dimension_numbers<[1], [0], [0], [1], [0, 0, 1, 1], [], []>} : vector<8x64xbf16>, vector<64x32xbf16>, vector<8x32xf32> -> vector<8x32xf32>
    %47 = vector.broadcast %4 : vector<1x32xf32> to vector<8x32xf32>
    %48 = arith.addf %46, %47 : vector<8x32xf32>
    %cst_36 = arith.constant 0.000000e+00 : f32
    %49 = vector.broadcast %cst_36 : f32 to vector<8x32xf32>
    %50 = arith.cmpf oge, %48, %49 : vector<8x32xf32>
    %cst_37 = arith.constant 0.00999999977 : f32
    %51 = vector.broadcast %cst_37 : f32 to vector<8x32xf32>
    %52 = arith.mulf %51, %48 : vector<8x32xf32>
    %53 = arith.select %50, %48, %52 : vector<8x32xi1>, vector<8x32xf32>
    %c0_38 = arith.constant 0 : index
    %c0_39 = arith.constant 0 : index
    %54 = vector.load %arg7[%c0_38, %c0_39] : memref<64x32xbf16, #tpu.memory_space<vmem>>, vector<64x32xbf16>
    %cst_40 = arith.constant dense<0.000000e+00> : vector<8x32xf32>
    %55 = tpu.matmul %44, %54, %cst_40 {dimension_numbers = #tpu.dot_dimension_numbers<[1], [0], [0], [1], [0, 0, 1, 1], [], []>} : vector<8x64xbf16>, vector<64x32xbf16>, vector<8x32xf32> -> vector<8x32xf32>
    %56 = vector.broadcast %3 : vector<1x32xf32> to vector<8x32xf32>
    %57 = arith.addf %55, %56 : vector<8x32xf32>
    %58 = arith.addf %53, %57 : vector<8x32xf32>
    %59 = arith.truncf %58 : vector<8x32xf32> to vector<8x32xbf16>
    %c0_41 = arith.constant 0 : index
    %c0_42 = arith.constant 0 : index
    %60 = vector.load %arg9[%c0_41, %c0_42] : memref<32x256xbf16, #tpu.memory_space<vmem>>, vector<32x256xbf16>
    %cst_43 = arith.constant dense<0.000000e+00> : vector<8x256xf32>
    %61 = tpu.matmul %59, %60, %cst_43 {dimension_numbers = #tpu.dot_dimension_numbers<[1], [0], [0], [1], [0, 0, 1, 1], [], []>} : vector<8x32xbf16>, vector<32x256xbf16>, vector<8x256xf32> -> vector<8x256xf32>
    %62 = vector.broadcast %5 : vector<1x256xf32> to vector<8x256xf32>
    %63 = arith.addf %61, %62 : vector<8x256xf32>
    %64 = vector.extract_strided_slice %63 {offsets = [0, 0], sizes = [8, 128], strides = [1, 1]} : vector<8x256xf32> to vector<8x128xf32>
    %65 = vector.extract_strided_slice %63 {offsets = [0, 128], sizes = [8, 128], strides = [1, 1]} : vector<8x256xf32> to vector<8x128xf32>
    %cst_44 = arith.constant 5.000000e-01 : f32
    %66 = vector.broadcast %cst_44 : f32 to vector<8x128xf32>
    %67 = arith.mulf %66, %65 : vector<8x128xf32>
    %68 = math.exp %67 : vector<8x128xf32>
    %69 = arith.mulf %18, %68 : vector<8x128xf32>
    %70 = arith.addf %64, %69 : vector<8x128xf32>
    %71 = arith.truncf %70 : vector<8x128xf32> to vector<8x128xbf16>
    %c0_45 = arith.constant 0 : index
    %c0_46 = arith.constant 0 : index
    %72 = vector.load %arg10[%c0_45, %c0_46] : memref<128x32xbf16, #tpu.memory_space<vmem>>, vector<128x32xbf16>
    %cst_47 = arith.constant dense<0.000000e+00> : vector<8x32xf32>
    %73 = tpu.matmul %71, %72, %cst_47 {dimension_numbers = #tpu.dot_dimension_numbers<[1], [0], [0], [1], [0, 0, 1, 1], [], []>} : vector<8x128xbf16>, vector<128x32xbf16>, vector<8x32xf32> -> vector<8x32xf32>
    %74 = vector.broadcast %6 : vector<1x32xf32> to vector<8x32xf32>
    %75 = arith.addf %73, %74 : vector<8x32xf32>
    %cst_48 = arith.constant 0.000000e+00 : f32
    %76 = vector.broadcast %cst_48 : f32 to vector<8x32xf32>
    %77 = arith.cmpf oge, %75, %76 : vector<8x32xf32>
    %cst_49 = arith.constant 0.00999999977 : f32
    %78 = vector.broadcast %cst_49 : f32 to vector<8x32xf32>
    %79 = arith.mulf %78, %75 : vector<8x32xf32>
    %80 = arith.select %77, %75, %79 : vector<8x32xi1>, vector<8x32xf32>
    %81 = arith.truncf %80 : vector<8x32xf32> to vector<8x32xbf16>
    %c0_50 = arith.constant 0 : index
    %c0_51 = arith.constant 0 : index
    %82 = vector.load %arg12[%c0_50, %c0_51] : memref<32x64xbf16, #tpu.memory_space<vmem>>, vector<32x64xbf16>
    %cst_52 = arith.constant dense<0.000000e+00> : vector<8x64xf32>
    %83 = tpu.matmul %81, %82, %cst_52 {dimension_numbers = #tpu.dot_dimension_numbers<[1], [0], [0], [1], [0, 0, 1, 1], [], []>} : vector<8x32xbf16>, vector<32x64xbf16>, vector<8x64xf32> -> vector<8x64xf32>
    %84 = vector.broadcast %8 : vector<1x64xf32> to vector<8x64xf32>
    %85 = arith.addf %83, %84 : vector<8x64xf32>
    %cst_53 = arith.constant 0.000000e+00 : f32
    %86 = vector.broadcast %cst_53 : f32 to vector<8x64xf32>
    %87 = arith.cmpf oge, %85, %86 : vector<8x64xf32>
    %cst_54 = arith.constant 0.00999999977 : f32
    %88 = vector.broadcast %cst_54 : f32 to vector<8x64xf32>
    %89 = arith.mulf %88, %85 : vector<8x64xf32>
    %90 = arith.select %87, %85, %89 : vector<8x64xi1>, vector<8x64xf32>
    %c0_55 = arith.constant 0 : index
    %c0_56 = arith.constant 0 : index
    %91 = vector.load %arg11[%c0_55, %c0_56] : memref<32x64xbf16, #tpu.memory_space<vmem>>, vector<32x64xbf16>
    %cst_57 = arith.constant dense<0.000000e+00> : vector<8x64xf32>
    %92 = tpu.matmul %81, %91, %cst_57 {dimension_numbers = #tpu.dot_dimension_numbers<[1], [0], [0], [1], [0, 0, 1, 1], [], []>} : vector<8x32xbf16>, vector<32x64xbf16>, vector<8x64xf32> -> vector<8x64xf32>
    %93 = vector.broadcast %7 : vector<1x64xf32> to vector<8x64xf32>
    %94 = arith.addf %92, %93 : vector<8x64xf32>
    %95 = arith.addf %90, %94 : vector<8x64xf32>
    %96 = arith.truncf %95 : vector<8x64xf32> to vector<8x64xbf16>
    %c0_58 = arith.constant 0 : index
    %c0_59 = arith.constant 0 : index
    %97 = vector.load %arg14[%c0_58, %c0_59] : memref<64x128xbf16, #tpu.memory_space<vmem>>, vector<64x128xbf16>
    %cst_60 = arith.constant dense<0.000000e+00> : vector<8x128xf32>
    %98 = tpu.matmul %96, %97, %cst_60 {dimension_numbers = #tpu.dot_dimension_numbers<[1], [0], [0], [1], [0, 0, 1, 1], [], []>} : vector<8x64xbf16>, vector<64x128xbf16>, vector<8x128xf32> -> vector<8x128xf32>
    %99 = vector.broadcast %10 : vector<1x128xf32> to vector<8x128xf32>
    %100 = arith.addf %98, %99 : vector<8x128xf32>
    %cst_61 = arith.constant 0.000000e+00 : f32
    %101 = vector.broadcast %cst_61 : f32 to vector<8x128xf32>
    %102 = arith.cmpf oge, %100, %101 : vector<8x128xf32>
    %cst_62 = arith.constant 0.00999999977 : f32
    %103 = vector.broadcast %cst_62 : f32 to vector<8x128xf32>
    %104 = arith.mulf %103, %100 : vector<8x128xf32>
    %105 = arith.select %102, %100, %104 : vector<8x128xi1>, vector<8x128xf32>
    %c0_63 = arith.constant 0 : index
    %c0_64 = arith.constant 0 : index
    %106 = vector.load %arg13[%c0_63, %c0_64] : memref<64x128xbf16, #tpu.memory_space<vmem>>, vector<64x128xbf16>
    %cst_65 = arith.constant dense<0.000000e+00> : vector<8x128xf32>
    %107 = tpu.matmul %96, %106, %cst_65 {dimension_numbers = #tpu.dot_dimension_numbers<[1], [0], [0], [1], [0, 0, 1, 1], [], []>} : vector<8x64xbf16>, vector<64x128xbf16>, vector<8x128xf32> -> vector<8x128xf32>
    %108 = vector.broadcast %9 : vector<1x128xf32> to vector<8x128xf32>
    %109 = arith.addf %107, %108 : vector<8x128xf32>
    %110 = arith.addf %105, %109 : vector<8x128xf32>
    %111 = arith.truncf %110 : vector<8x128xf32> to vector<8x128xbf16>
    %c0_66 = arith.constant 0 : index
    %c0_67 = arith.constant 0 : index
    %112 = vector.load %arg15[%c0_66, %c0_67] : memref<128x256xbf16, #tpu.memory_space<vmem>>, vector<128x256xbf16>
    %cst_68 = arith.constant dense<0.000000e+00> : vector<8x256xf32>
    %113 = tpu.matmul %111, %112, %cst_68 {dimension_numbers = #tpu.dot_dimension_numbers<[1], [0], [0], [1], [0, 0, 1, 1], [], []>} : vector<8x128xbf16>, vector<128x256xbf16>, vector<8x256xf32> -> vector<8x256xf32>
    %114 = vector.broadcast %11 : vector<1x256xf32> to vector<8x256xf32>
    %115 = arith.addf %113, %114 : vector<8x256xf32>
    %c0_69 = arith.constant 0 : index
    %c0_70 = arith.constant 0 : index
    %116 = vector.load %arg16[%c0_69, %c0_70] : memref<128x96xbf16, #tpu.memory_space<vmem>>, vector<128x96xbf16>
    %cst_71 = arith.constant dense<0.000000e+00> : vector<8x96xf32>
    %117 = tpu.matmul %71, %116, %cst_71 {dimension_numbers = #tpu.dot_dimension_numbers<[1], [0], [0], [1], [0, 0, 1, 1], [], []>} : vector<8x128xbf16>, vector<128x96xbf16>, vector<8x96xf32> -> vector<8x96xf32>
    %118 = vector.broadcast %12 : vector<1x96xf32> to vector<8x96xf32>
    %119 = arith.addf %117, %118 : vector<8x96xf32>
    %cst_72 = arith.constant 0.000000e+00 : f32
    %120 = vector.broadcast %cst_72 : f32 to vector<8x96xf32>
    %121 = arith.cmpf oge, %119, %120 : vector<8x96xf32>
    %cst_73 = arith.constant 0.00999999977 : f32
    %122 = vector.broadcast %cst_73 : f32 to vector<8x96xf32>
    %123 = arith.mulf %122, %119 : vector<8x96xf32>
    %124 = arith.select %121, %119, %123 : vector<8x96xi1>, vector<8x96xf32>
    %125 = arith.truncf %124 : vector<8x96xf32> to vector<8x96xbf16>
    %c0_74 = arith.constant 0 : index
    %c0_75 = arith.constant 0 : index
    %126 = vector.load %arg17[%c0_74, %c0_75] : memref<96x64xbf16, #tpu.memory_space<vmem>>, vector<96x64xbf16>
    %cst_76 = arith.constant dense<0.000000e+00> : vector<8x64xf32>
    %127 = tpu.matmul %125, %126, %cst_76 {dimension_numbers = #tpu.dot_dimension_numbers<[1], [0], [0], [1], [0, 0, 1, 1], [], []>} : vector<8x96xbf16>, vector<96x64xbf16>, vector<8x64xf32> -> vector<8x64xf32>
    %128 = vector.broadcast %13 : vector<1x64xf32> to vector<8x64xf32>
    %129 = arith.addf %127, %128 : vector<8x64xf32>
    %c0_77 = arith.constant 0 : index
    %c0_78 = arith.constant 0 : index
    %130 = vector.load %arg18[%c0_77, %c0_78] : memref<96x64xbf16, #tpu.memory_space<vmem>>, vector<96x64xbf16>
    %cst_79 = arith.constant dense<0.000000e+00> : vector<8x64xf32>
    %131 = tpu.matmul %125, %130, %cst_79 {dimension_numbers = #tpu.dot_dimension_numbers<[1], [0], [0], [1], [0, 0, 1, 1], [], []>} : vector<8x96xbf16>, vector<96x64xbf16>, vector<8x64xf32> -> vector<8x64xf32>
    %132 = vector.broadcast %14 : vector<1x64xf32> to vector<8x64xf32>
    %133 = arith.addf %131, %132 : vector<8x64xf32>
    %cst_80 = arith.constant 0.000000e+00 : f32
    %134 = vector.broadcast %cst_80 : f32 to vector<8x64xf32>
    %135 = arith.cmpf oge, %133, %134 : vector<8x64xf32>
    %cst_81 = arith.constant 0.00999999977 : f32
    %136 = vector.broadcast %cst_81 : f32 to vector<8x64xf32>
    %137 = arith.mulf %136, %133 : vector<8x64xf32>
    %138 = arith.select %135, %133, %137 : vector<8x64xi1>, vector<8x64xf32>
    %139 = arith.truncf %138 : vector<8x64xf32> to vector<8x64xbf16>
    %c0_82 = arith.constant 0 : index
    %c0_83 = arith.constant 0 : index
    %140 = vector.load %arg19[%c0_82, %c0_83] : memref<64x64xbf16, #tpu.memory_space<vmem>>, vector<64x64xbf16>
    %cst_84 = arith.constant dense<0.000000e+00> : vector<8x64xf32>
    %141 = tpu.matmul %139, %140, %cst_84 {dimension_numbers = #tpu.dot_dimension_numbers<[1], [0], [0], [1], [0, 0, 1, 1], [], []>} : vector<8x64xbf16>, vector<64x64xbf16>, vector<8x64xf32> -> vector<8x64xf32>
    %142 = vector.broadcast %15 : vector<1x64xf32> to vector<8x64xf32>
    %143 = arith.addf %141, %142 : vector<8x64xf32>
    %cst_85 = arith.constant 0.000000e+00 : f32
    %144 = vector.broadcast %cst_85 : f32 to vector<8x64xf32>
    %145 = arith.cmpf oge, %143, %144 : vector<8x64xf32>
    %cst_86 = arith.constant 0.00999999977 : f32
    %146 = vector.broadcast %cst_86 : f32 to vector<8x64xf32>
    %147 = arith.mulf %146, %143 : vector<8x64xf32>
    %148 = arith.select %145, %143, %147 : vector<8x64xi1>, vector<8x64xf32>
    %149 = arith.addf %148, %129 : vector<8x64xf32>
    %150 = arith.truncf %149 : vector<8x64xf32> to vector<8x64xbf16>
    %c0_87 = arith.constant 0 : index
    %c0_88 = arith.constant 0 : index
    %151 = vector.load %arg20[%c0_87, %c0_88] : memref<64x128xbf16, #tpu.memory_space<vmem>>, vector<64x128xbf16>
    %cst_89 = arith.constant dense<0.000000e+00> : vector<8x128xf32>
    %152 = tpu.matmul %150, %151, %cst_89 {dimension_numbers = #tpu.dot_dimension_numbers<[1], [0], [0], [1], [0, 0, 1, 1], [], []>} : vector<8x64xbf16>, vector<64x128xbf16>, vector<8x128xf32> -> vector<8x128xf32>
    %153 = vector.broadcast %16 : vector<1x128xf32> to vector<8x128xf32>
    %154 = arith.addf %152, %153 : vector<8x128xf32>
    %c0_90 = arith.constant 0 : index
    %c0_91 = arith.constant 0 : index
    %155 = vector.load %arg21[%c0_90, %c0_91] : memref<8x256xf32, #tpu.memory_space<vmem>>, vector<8x256xf32>
    tpu.vector_store %arg21[%c0_90, %c0_91], %115 {strides = array<i32>} : memref<8x256xf32, #tpu.memory_space<vmem>>, vector<8x256xf32>,
    %c0_92 = arith.constant 0 : index
    %c0_93 = arith.constant 0 : index
    %156 = vector.load %arg22[%c0_92, %c0_93] : memref<8x512xf32, #tpu.memory_space<vmem>>, vector<8x128xf32>
    tpu.vector_store %arg22[%c0_92, %c0_93], %154 {strides = array<i32>} : memref<8x512xf32, #tpu.memory_space<vmem>>, vector<8x128xf32>,
    %c0_94 = arith.constant 0 : index
    %c128_95 = arith.constant 128 : index
    %157 = vector.load %arg22[%c0_94, %c128_95] : memref<8x512xf32, #tpu.memory_space<vmem>>, vector<8x128xf32>
    tpu.vector_store %arg22[%c0_94, %c128_95], %64 {strides = array<i32>} : memref<8x512xf32, #tpu.memory_space<vmem>>, vector<8x128xf32>,
    %c0_96 = arith.constant 0 : index
    %c256_97 = arith.constant 256 : index
    %158 = vector.load %arg22[%c0_96, %c256_97] : memref<8x512xf32, #tpu.memory_space<vmem>>, vector<8x128xf32>
    tpu.vector_store %arg22[%c0_96, %c256_97], %65 {strides = array<i32>} : memref<8x512xf32, #tpu.memory_space<vmem>>, vector<8x128xf32>,
    %c0_98 = arith.constant 0 : index
    %c384_99 = arith.constant 384 : index
    %159 = vector.load %arg22[%c0_98, %c384_99] : memref<8x512xf32, #tpu.memory_space<vmem>>, vector<8x128xf32>
    tpu.vector_store %arg22[%c0_98, %c384_99], %70 {strides = array<i32>} : memref<8x512xf32, #tpu.memory_space<vmem>>, vector<8x128xf32>,
    return
  }
  func.func @transform_0(%arg0: i32) -> (i32, i32) {
    %c0_i32 = arith.constant 0 : i32
    %c0_i32_0 = arith.constant 0 : i32
    return %arg0, %c0_i32 : i32, i32
  }
  func.func @transform_1(%arg0: i32) -> (i32, i32) {
    %c0_i32 = arith.constant 0 : i32
    %c0_i32_0 = arith.constant 0 : i32
    return %arg0, %c0_i32 : i32, i32
  }
  func.func @transform_2(%arg0: i32) -> (i32, i32) {
    %c0_i32 = arith.constant 0 : i32
    %c0_i32_0 = arith.constant 0 : i32
    %c0_i32_1 = arith.constant 0 : i32
    return %c0_i32, %c0_i32_0 : i32, i32
  }
  func.func @transform_3(%arg0: i32) -> (i32, i32) {
    %c0_i32 = arith.constant 0 : i32
    %c0_i32_0 = arith.constant 0 : i32
    %c0_i32_1 = arith.constant 0 : i32
    return %c0_i32, %c0_i32_0 : i32, i32
  }
  func.func @transform_4(%arg0: i32) -> (i32, i32) {
    %c0_i32 = arith.constant 0 : i32
    %c0_i32_0 = arith.constant 0 : i32
    %c0_i32_1 = arith.constant 0 : i32
    return %c0_i32, %c0_i32_0 : i32, i32
  }
  func.func @transform_5(%arg0: i32) -> (i32, i32) {
    %c0_i32 = arith.constant 0 : i32
    %c0_i32_0 = arith.constant 0 : i32
    %c0_i32_1 = arith.constant 0 : i32
    return %c0_i32, %c0_i32_0 : i32, i32
  }
  func.func @transform_6(%arg0: i32) -> (i32, i32) {
    %c0_i32 = arith.constant 0 : i32
    %c0_i32_0 = arith.constant 0 : i32
    %c0_i32_1 = arith.constant 0 : i32
    return %c0_i32, %c0_i32_0 : i32, i32
  }
  func.func @transform_7(%arg0: i32) -> (i32, i32) {
    %c0_i32 = arith.constant 0 : i32
    %c0_i32_0 = arith.constant 0 : i32
    %c0_i32_1 = arith.constant 0 : i32
    return %c0_i32, %c0_i32_0 : i32, i32
  }
  func.func @transform_8(%arg0: i32) -> (i32, i32) {
    %c0_i32 = arith.constant 0 : i32
    %c0_i32_0 = arith.constant 0 : i32
    %c0_i32_1 = arith.constant 0 : i32
    return %c0_i32, %c0_i32_0 : i32, i32
  }
  func.func @transform_9(%arg0: i32) -> (i32, i32) {
    %c0_i32 = arith.constant 0 : i32
    %c0_i32_0 = arith.constant 0 : i32
    %c0_i32_1 = arith.constant 0 : i32
    return %c0_i32, %c0_i32_0 : i32, i32
  }
  func.func @transform_10(%arg0: i32) -> (i32, i32) {
    %c0_i32 = arith.constant 0 : i32
    %c0_i32_0 = arith.constant 0 : i32
    %c0_i32_1 = arith.constant 0 : i32
    return %c0_i32, %c0_i32_0 : i32, i32
  }
  func.func @transform_11(%arg0: i32) -> (i32, i32) {
    %c0_i32 = arith.constant 0 : i32
    %c0_i32_0 = arith.constant 0 : i32
    %c0_i32_1 = arith.constant 0 : i32
    return %c0_i32, %c0_i32_0 : i32, i32
  }
  func.func @transform_12(%arg0: i32) -> (i32, i32) {
    %c0_i32 = arith.constant 0 : i32
    %c0_i32_0 = arith.constant 0 : i32
    %c0_i32_1 = arith.constant 0 : i32
    return %c0_i32, %c0_i32_0 : i32, i32
  }
  func.func @transform_13(%arg0: i32) -> (i32, i32) {
    %c0_i32 = arith.constant 0 : i32
    %c0_i32_0 = arith.constant 0 : i32
    %c0_i32_1 = arith.constant 0 : i32
    return %c0_i32, %c0_i32_0 : i32, i32
  }
  func.func @transform_14(%arg0: i32) -> (i32, i32) {
    %c0_i32 = arith.constant 0 : i32
    %c0_i32_0 = arith.constant 0 : i32
    %c0_i32_1 = arith.constant 0 : i32
    return %c0_i32, %c0_i32_0 : i32, i32
  }
  func.func @transform_15(%arg0: i32) -> (i32, i32) {
    %c0_i32 = arith.constant 0 : i32
    %c0_i32_0 = arith.constant 0 : i32
    %c0_i32_1 = arith.constant 0 : i32
    return %c0_i32, %c0_i32_0 : i32, i32
  }
  func.func @transform_16(%arg0: i32) -> (i32, i32) {
    %c0_i32 = arith.constant 0 : i32
    %c0_i32_0 = arith.constant 0 : i32
    %c0_i32_1 = arith.constant 0 : i32
    return %c0_i32, %c0_i32_0 : i32, i32
  }
  func.func @transform_17(%arg0: i32) -> (i32, i32) {
    %c0_i32 = arith.constant 0 : i32
    %c0_i32_0 = arith.constant 0 : i32
    %c0_i32_1 = arith.constant 0 : i32
    return %c0_i32, %c0_i32_0 : i32, i32
  }
  func.func @transform_18(%arg0: i32) -> (i32, i32) {
    %c0_i32 = arith.constant 0 : i32
    %c0_i32_0 = arith.constant 0 : i32
    %c0_i32_1 = arith.constant 0 : i32
    return %c0_i32, %c0_i32_0 : i32, i32
  }
  func.func @transform_19(%arg0: i32) -> (i32, i32) {
    %c0_i32 = arith.constant 0 : i32
    %c0_i32_0 = arith.constant 0 : i32
    %c0_i32_1 = arith.constant 0 : i32
    return %c0_i32, %c0_i32_0 : i32, i32
  }
  func.func @transform_20(%arg0: i32) -> (i32, i32) {
    %c0_i32 = arith.constant 0 : i32
    %c0_i32_0 = arith.constant 0 : i32
    return %arg0, %c0_i32 : i32, i32
  }
  func.func @transform_21(%arg0: i32) -> (i32, i32) {
    %c0_i32 = arith.constant 0 : i32
    %c0_i32_0 = arith.constant 0 : i32
    return %arg0, %c0_i32 : i32, i32
  }
}

</mosaic_0001>

<bundles_post_ra>
// kernel: cvae_resdnn_forward.1
= control target key start
LH: loop header
LB: loop body
LE: loop exit
PB: predicated region body
PF: predicated region fallthrough
CT: control target
= control target key end

     0   :  { %s3138_s0 = inlined_call_operand.hbm [shape: f32[8,256], index: 0, kind: input, shape index: {}]   ;;  %s3139_s1 = inlined_call_operand.vmem [shape: f32[8,128], index: 1, kind: input, shape index: {}]   ;;  %s3140_s2 = inlined_call_operand.vmem [shape: f32[1,2432], index: 2, kind: input, shape index: {}]   ;;  %s3141_s3 = inlined_call_operand.vmem [shape: bf16[256,128], index: 3, kind: input, shape index: {}]   ;;  %s3142_s4 = inlined_call_operand.vmem [shape: bf16[128,64], index: 4, kind: input, shape index: {}]   ;;  %s3143_s5 = inlined_call_operand.vmem [shape: bf16[128,64], index: 5, kind: input, shape index: {}]   ;;  %s3144_s6 = inlined_call_operand.vmem [shape: bf16[64,32], index: 6, kind: input, shape index: {}]   ;;  %s3145_s7 = inlined_call_operand.vmem [shape: bf16[64,32], index: 7, kind: input, shape index: {}]   ;;  %s3146_s8 = inlined_call_operand.vmem [shape: bf16[32,256], index: 8, kind: input, shape index: {}]   ;;  %s3147_s9 = inlined_call_operand.vmem [shape: bf16[128,32], index: 9, kind: input, shape index: {}]   ;;  %s3148_s10 = inlined_call_operand.hbm [shape: bf16[32,64], index: 10, kind: input, shape index: {}]   ;;  %s3149_s11 = inlined_call_operand.hbm [shape: bf16[32,64], index: 11, kind: input, shape index: {}]   ;;  %s3150_s12 = inlined_call_operand.vmem [shape: bf16[64,128], index: 12, kind: input, shape index: {}]   ;;  %s3151_s13 = inlined_call_operand.vmem [shape: bf16[64,128], index: 13, kind: input, shape index: {}]   ;;  %s3152_s14 = inlined_call_operand.vmem [shape: bf16[128,256], index: 14, kind: input, shape index: {}]   ;;  %s3153_s15 = inlined_call_operand.vmem [shape: bf16[128,96], index: 15, kind: input, shape index: {}]   ;;  %s3154_s16 = inlined_call_operand.vmem [shape: bf16[96,64], index: 16, kind: input, shape index: {}]   ;;  %s3155_s17 = inlined_call_operand.vmem [shape: bf16[96,64], index: 17, kind: input, shape index: {}]   ;;  %s3156_s18 = inlined_call_operand.vmem [shape: bf16[64,64], index: 18, kind: input, shape index: {}]   ;;  %s3157_s19 = inlined_call_operand.vmem [shape: bf16[64,128], index: 19, kind: input, shape index: {}]   ;;  %s3158_s20 = inlined_call_operand.hbm [shape: f32[8,256], index: 20, kind: output, shape index: {0}]   ;;  %s3159_s21 = inlined_call_operand.vmem [shape: f32[8,512], index: 21, kind: output, shape index: {1}]  }
   0x1   :  { %3164 = sst [smem:[#allocation12_spill]] %s3138_s0 }
   0x2   :  { %3165 = sst [smem:[#allocation13_spill]] %s3139_s1 }
   0x3   :  { %3166 = sst [smem:[#allocation14_spill]] %s3140_s2 }
   0x4   :  { %3167 = sst [smem:[#allocation15_spill]] %s3141_s3 }
   0x5   :  { %3168 = sst [smem:[#allocation16_spill]] %s3142_s4 }
   0x6   :  { %3169 = sst [smem:[#allocation17_spill]] %s3143_s5 }
   0x7   :  { %27 = vsyncpa [#allocation3], 0 }
   0x8   :  { %28 = vsyncpa [#allocation6], 0 }
   0x9   :  { %29 = vsyncpa [#allocation4], 0  ;;  %s2502_s2 = smov [#allocation5]  }
   0xa   :  { %s63_s25 = sshll.u32 %s2502_s2, 4  ;;  %s64_s25 = int_to_ptr.vmem [resolvable:$true] %s63_s25 }
   0xb   :  { %s2424_s26 = scalar_lea.vmem %s64_s25, 256  ;;  %p2429_p1 = scmp.lt.s32.totalorder %s64_s25, %s64_s25 }
   0xc   :  { %p2425_p0 = scmp.ne.s32.totalorder %s64_s25, %s2424_s26  ;;  %p2430_p2 = scmp.lt.s32.totalorder %s2424_s26, %s2424_s26 }
   0xe   :  { %p2431_p3 = por %p2430_p2, %p2429_p1 }
  0x10   :  { %p2432_p4 = pnand %p2431_p3, %p2425_p0 }
  0x12   :  { %2435 = shalt.err (!%p2432_p4)
}
  0x13   :  { %s2503_s27 = smov 64   ;;  %s2504_s3 = smov 4  }
  0x14   :  { %69 = dma.hbm_to_vmem [thread:$0]  %s3148_s10, 256, %s64_s25, [#allocation6], %s2503_s27, %s2503_s27, %s2504_s3  }
  0x15   :  { %s2505_s0 = smov [#allocation2]   ;;  %s2506_s30 = smov [#allocation7]  }
  0x16   :  { %s36_s4 = sshll.u32 %s2505_s0, 4  ;;  %s75_s5 = sshll.u32 %s2506_s30, 4  ;;  %s37_s4 = int_to_ptr.vmem [resolvable:$true] %s36_s4  ;;  %s76_s5 = int_to_ptr.vmem [resolvable:$true] %s75_s5 }
  0x17   :  { %s2444_s22 = scalar_lea.vmem %s37_s4, 256  ;;  %p2449_p6 = scmp.lt.s32.totalorder %s37_s4, %s37_s4 }
  0x18   :  { %p2445_p5 = scmp.ne.s32.totalorder %s37_s4, %s2444_s22  ;;  %p2450_p7 = scmp.lt.s32.totalorder %s2444_s22, %s2444_s22 }
  0x1a   :  { %p2451_p8 = por %p2450_p7, %p2449_p6 }
  0x1c   :  { %p2452_p9 = pnand %p2451_p8, %p2445_p5 }
  0x1e   :  { %2455 = shalt.err (!%p2452_p9)
}
  0x1f   :  { %s3170_s24 = sld [smem:[#allocation12_spill]]  ;;  %s2464_s2 = scalar_lea.vmem %s76_s5, 256 }
  0x20   :  { %p2465_p10 = scmp.ne.s32.totalorder %s76_s5, %s2464_s2  ;;  %p2469_p11 = scmp.lt.s32.totalorder %s76_s5, %s76_s5 }
  0x21   :  { %p2470_p12 = scmp.lt.s32.totalorder %s2464_s2, %s2464_s2 }
  0x23   :  { %p2471_p13 = por %p2470_p12, %p2469_p11 }
  0x25   :  { %39 = dma.hbm_to_vmem [thread:$0]  %s3170_s24, 256, %s37_s4, [#allocation3]  }
  0x26   :  { %p2472_p0 = pnand %p2471_p13, %p2465_p10 }
  0x28   :  { %2475 = shalt.err (!%p2472_p0)
}
  0x29   :  { %81 = dma.hbm_to_vmem [thread:$0]  %s3149_s11, 256, %s76_s5, [#allocation6], %s2503_s27, %s2503_s27, %s2504_s3  }
  0x2a   :  { %2496 = dma.done.wait [#allocation3], 256  }
  0x2b   :  { %2497 = vsyncadd [#allocation3], 4294967040 }
  0x2c   :  { %2498 = dma.done.wait [#allocation6], 512  }
  0x2d   :  { %2499 = vsyncadd [#allocation6], 4294966784  ;;  %v2507_v0 = vmov 0.0   ;;  %s3171_s29 = sld [smem:[#allocation15_spill]]  ;;  %v126_v12 = vld [vmem:[#allocation2 + $0x8] sm:$0xff]  ;;  %v125_v22 = vld [vmem:[#allocation2] sm:$0xff] }
  0x2e   :  { %2087 = vmatprep.subr.bf16.mxu1 %v2507_v0  ;;  %v129_v13 = vpack.c.bf16 %v126_v12, %v126_v12  ;;  %s3172_s3 = sld [smem:[#allocation17_spill]]  ;;  %v128_v25 = vpack.c.bf16 %v125_v22, %v125_v22  ;;  %vm2508_vm0 = vmmov 0   ;;  %v2328_v46 = vld [vmem:[%s3145_s7 + $0x18] sm:$0xff]   ;;  %v2329_v48 = vld [vmem:[%s3145_s7 + $0x10] sm:$0xff]   ;;  %v2330_v49 = vld [vmem:[%s3145_s7 + $0x8] sm:$0xff]   ;;  %vm571_vm3 = vcmask 523264  }
  0x2f   :  { %s3173_s24 = sld [smem:[#allocation16_spill]]  ;;  %2103 = vmatprep.mubr.msk.bf16.mxu1 %vm2508_vm0, %v2507_v0  ;;  %v2331_v50 = vld [vmem:[%s3145_s7] sm:$0xff]   ;;  %v2509_v12 = vmov 0   ;;  %vm733_vm5 = vcmask 261120   ;;  %vm1510_vm10 = vcmask 785408  }
  0x30   :  { %296 = vmatprep.mubr.bf16.mxu0 %v129_v13  ;;  %s3174_s22 = sld [smem:[#allocation14_spill]]  ;;  %v2342_v13 = vld [vmem:[%s3147_s9 + $0x38] sm:$0xff]  }
  0x33   :  { %v2296_v1 = vld [vmem:[%s3171_s29 + $0x78] sm:$0xff]   ;;  %v2298_v3 = vld [vmem:[%s3171_s29 + $0x70] sm:$0xff]   ;;  %v2300_v5 = vld [vmem:[%s3171_s29 + $0x68] sm:$0xff]  }
  0x34   :  { %v2297_v2 = vld [vmem:[%s3171_s29 + $0x38] sm:$0xff]   ;;  %1979 = vmatprep.subr.bf16.mxu0 %v2296_v1  ;;  %v2299_v4 = vld [vmem:[%s3171_s29 + $0x30] sm:$0xff]   ;;  %v2301_v6 = vld [vmem:[%s3171_s29 + $0x28] sm:$0xff]  }
  0x35   :  { %1980 = vmatpush3.bf16.msra.mxu0 %v2297_v2  ;;  %v2302_v7 = vld [vmem:[%s3171_s29 + $0x60] sm:$0xff]   ;;  %v2304_v9 = vld [vmem:[%s3171_s29 + $0x58] sm:$0xff]   ;;  %v2306_v11 = vld [vmem:[%s3171_s29 + $0x50] sm:$0xff]  }
  0x36   :  { %1981 = vmatprep.subr.bf16.mxu0 %v2298_v3  ;;  %v2303_v8 = vld [vmem:[%s3171_s29 + $0x20] sm:$0xff]   ;;  %v2305_v10 = vld [vmem:[%s3171_s29 + $0x18] sm:$0xff]   ;;  %v2307_v15 = vld [vmem:[%s3171_s29 + $0x10] sm:$0xff]  }
  0x37   :  { %v2312_v14 = vld [vmem:[%s3172_s3 + $0x38] sm:$0xff]   ;;  %v2308_v16 = vld [vmem:[%s3171_s29 + $0x48] sm:$0xff]   ;;  %v2314_v17 = vld [vmem:[%s3172_s3 + $0x30] sm:$0xff]  }
  0x38   :  { %2088 = vmatpush3.bf16.msra.mxu1 %v2312_v14  ;;  %v2309_v18 = vld [vmem:[%s3171_s29 + $0x8] sm:$0xff]   ;;  %v2310_v19 = vld [vmem:[%s3171_s29 + $0x40] sm:$0xff]   ;;  %v2313_v24 = vld [vmem:[%s3173_s24 + $0x38] sm:$0xff]  }
  0x39   :  { %1982 = vmatpush3.bf16.msra.mxu0 %v2299_v4  ;;  %2089 = vmatprep.subr.bf16.mxu1 %v2507_v0  ;;  %v2316_v20 = vld [vmem:[%s3172_s3 + $0x28] sm:$0xff]   ;;  %v2311_v21 = vld [vmem:[%s3171_s29] sm:$0xff]   ;;  %v2320_v26 = vld [vmem:[%s3172_s3 + $0x18] sm:$0xff]  }
  0x3a   :  { %1983 = vmatprep.subr.bf16.mxu0 %v2300_v5  ;;  %v2318_v23 = vld [vmem:[%s3172_s3 + $0x20] sm:$0xff]   ;;  %v2315_v27 = vld [vmem:[%s3173_s24 + $0x30] sm:$0xff]   ;;  %v2317_v28 = vld [vmem:[%s3173_s24 + $0x28] sm:$0xff]  }
  0x3b   :  { %v2319_v29 = vld [vmem:[%s3173_s24 + $0x20] sm:$0xff]   ;;  %v2321_v30 = vld [vmem:[%s3173_s24 + $0x18] sm:$0xff]   ;;  %v2322_v31 = vld [vmem:[%s3172_s3 + $0x10] sm:$0xff]  }
  0x3c   :  { %2090 = vmatpush3.bf16.msra.mxu1 %v2314_v17  ;;  %v2323_v32 = vld [vmem:[%s3173_s24 + $0x10] sm:$0xff]   ;;  %v2324_v33 = vld [vmem:[%s3172_s3 + $0x8] sm:$0xff]   ;;  %v2326_v35 = vld [vmem:[%s3172_s3] sm:$0xff]   ;;  %s3175_s3 = sld [smem:[#allocation13_spill]] }
  0x3d   :  { %1984 = vmatpush3.bf16.msra.mxu0 %v2301_v6  ;;  %2091 = vmatprep.subr.bf16.mxu1 %v2507_v0  ;;  %v2325_v34 = vld [vmem:[%s3173_s24 + $0x8] sm:$0xff]   ;;  %v2327_v36 = vld [vmem:[%s3173_s24] sm:$0xff]   ;;  %v2332_v3 = vld [vmem:[%s3144_s6 + $0x18] sm:$0xff]  }
  0x3e   :  { %1985 = vmatprep.subr.bf16.mxu0 %v2302_v7  ;;  %v1845_v38 = vld [vmem:[%s3174_s22] ss:$0 sm:$0xff]  ;;  %v1862_v51 = vld [vmem:[%s3174_s22 + $0x2] ss:$0 sm:$0xff]  ;;  %v1871_v55 = vld [vmem:[%s3174_s22 + $0x1] ss:$0 sm:$0xff] }
  0x3f   :  { %v2333_v5 = vld [vmem:[%s3144_s6 + $0x10] sm:$0xff]   ;;  %v2334_v6 = vld [vmem:[%s3144_s6 + $0x8] sm:$0xff]   ;;  %v2335_v7 = vld [vmem:[%s3144_s6] sm:$0xff]  }
  0x40   :  { %2092 = vmatpush3.bf16.msra.mxu1 %v2316_v20 }
  0x41   :  { %1986 = vmatpush3.bf16.msra.mxu0 %v2303_v8  ;;  %2093 = vmatprep.subr.bf16.mxu1 %v2507_v0  ;;  %v2336_v8 = vld [vmem:[%s3146_s8 + $0x10] ss:$8 sps:$4 sm:$0xff]  }
  0x42   :  { %1987 = vmatprep.subr.bf16.mxu0 %v2304_v9  ;;  %v2338_v9 = vld [vmem:[%s3146_s8 + $0x14] ss:$8 sps:$4 sm:$0xff]  }
  0x44   :  { %2094 = vmatpush3.bf16.msra.mxu1 %v2318_v23 }
  0x45   :  { %1988 = vmatpush3.bf16.msra.mxu0 %v2305_v10  ;;  %2095 = vmatprep.subr.bf16.mxu1 %v2507_v0  ;;  %v2341_v10 = vld [vmem:[%s3146_s8 + $0x4] ss:$8 sps:$4 sm:$0xff]  }
  0x46   :  { %1989 = vmatprep.subr.bf16.mxu0 %v2306_v11  ;;  %v2339_v11 = vld [vmem:[%s3146_s8] ss:$8 sps:$4 sm:$0xff]  }
  0x48   :  { %2096 = vmatpush3.bf16.msra.mxu1 %v2320_v26 }
  0x49   :  { %1990 = vmatpush3.bf16.msra.mxu0 %v2307_v15  ;;  %2097 = vmatprep.subr.bf16.mxu1 %v2507_v0 }
  0x4a   :  { %1991 = vmatprep.subr.bf16.mxu0 %v2308_v16 }
  0x4c   :  { %2098 = vmatpush3.bf16.msra.mxu1 %v2322_v31  ;;  %v2344_v31 = vld [vmem:[%s3147_s9 + $0x28] sm:$0xff]  }
  0x4d   :  { %1992 = vmatpush3.bf16.msra.mxu0 %v2309_v18  ;;  %2099 = vmatprep.subr.bf16.mxu1 %v2507_v0  ;;  %v1880_v18 = vld [vmem:[%s3174_s22 + $0x4] ss:$0 sm:$0xff] }
  0x4e   :  { %1993 = vmatprep.subr.bf16.mxu0 %v2310_v19 }
  0x50   :  { %2100 = vmatpush3.bf16.msra.mxu1 %v2324_v33  ;;  %v2346_v33 = vld [vmem:[%s3147_s9 + $0x18] sm:$0xff]  }
  0x51   :  { %1994 = vmatpush3.bf16.msra.mxu0 %v2311_v21  ;;  %2101 = vmatprep.subr.bf16.mxu1 %v2507_v0  ;;  %v1886_v21 = vld [vmem:[%s3174_s22 + $0x3] ss:$0 sm:$0xff] }
  0x52   :  { %2107 = vmatprep.subr.bf16.mxu0 %v2507_v0 }
  0x54   :  { %297 = vmatmul.mubr.bf16.vlgmr.msra.gmra.mxu0 %v128_v25  ;;  %2102 = vmatpush3.bf16.msra.mxu1 %v2326_v35  ;;  %v2348_v35 = vld [vmem:[%s3147_s9 + $0x8] sm:$0xff]  }
  0x55   :  { %2108 = vmatpush3.bf16.msra.mxu0 %v2313_v24  ;;  %2123 = vmatprep.mubr.msk.bf16.mxu0 %vm2508_vm0, %v2507_v0 }
  0x56   :  { %2109 = vmatprep.subr.bf16.mxu0 %v2507_v0  ;;  %2127 = vmatprep.subr.bf16.mxu1 %v2507_v0 }
  0x59   :  { %2110 = vmatpush3.bf16.msra.mxu0 %v2315_v27 }
  0x5a   :  { %2111 = vmatprep.subr.bf16.mxu0 %v2507_v0 }
  0x5d   :  { %2112 = vmatpush3.bf16.msra.mxu0 %v2317_v28 }
  0x5e   :  { %2113 = vmatprep.subr.bf16.mxu0 %v2507_v0 }
  0x61   :  { %2114 = vmatpush3.bf16.msra.mxu0 %v2319_v29 }
  0x62   :  { %2115 = vmatprep.subr.bf16.mxu0 %v2507_v0 }
  0x65   :  { %2116 = vmatpush3.bf16.msra.mxu0 %v2321_v30  ;;  %v2343_v30 = vld [vmem:[%s3147_s9 + $0x30] sm:$0xff]  }
  0x66   :  { %2117 = vmatprep.subr.bf16.mxu0 %v2507_v0 }
  0x69   :  { %2118 = vmatpush3.bf16.msra.mxu0 %v2323_v32  ;;  %v2345_v32 = vld [vmem:[%s3147_s9 + $0x20] sm:$0xff]  }
  0x6a   :  { %2119 = vmatprep.subr.bf16.mxu0 %v2507_v0 }
  0x6d   :  { %2120 = vmatpush3.bf16.msra.mxu0 %v2325_v34  ;;  %v2347_v34 = vld [vmem:[%s3147_s9 + $0x10] sm:$0xff]  }
  0x6e   :  { %2121 = vmatprep.subr.bf16.mxu0 %v2507_v0 }
  0x71   :  { %2122 = vmatpush3.bf16.msra.mxu0 %v2327_v36  ;;  %v2349_v36 = vld [vmem:[%s3147_s9] sm:$0xff]  }
  0x72   :  { %749 = vmatprep.subr.bf16.mxu0 %v2338_v9  ;;  %v2356_v9 = vld [vmem:[%s3150_s12 + $0x10] sm:$0xff]  }
 0x114   :  { %v1995_v37 = vpop.f32.mrf.mxu0 }
 0x116   :  { %v1996_v39 = vpop.f32.mrf.mxu0 }
 0x117   :  { %v1997_v40 = vadd.f32 %v1996_v39, %v1995_v37  ;;  %v703_v37 = vlaneseq }
 0x118   :  { %v1998_v41 = vpop.f32.mrf.mxu0 }
 0x119   :  { %v299_v42 = vadd.f32 %v1997_v40, %v1845_v38  ;;  %v2851_v38 = vshrl.u32 %v703_v37, 7  ;;  %v113_v40 = vld [vmem:[%s3174_s22 + $0x5] sm:$0x3]  ;;  %v2373_v37 = vld [vmem:[%s3152_s14 + $0x60] ss:$8 sps:$4 sm:$0xff]  }
 0x11a   :  { %v1999_v43 = vpop.f32.mrf.mxu0 }
 0x11b   :  { %v305_v44 = vmul.f32 0.01, %v299_v42  ;;  %vm304_vm1 = vcmp.ge.f32.partialorder %v299_v42, 0.0  ;;  %v705_v39 = vsub.s32 0, %v2851_v38  ;;  %v709_v41 = vsub.s32 1, %v2851_v38 }
 0x11d   :  { %v306_v45 = vsel %vm304_vm1, %v299_v42, %v305_v44  ;;  %v706_v42 = vrot.slane %v113_v40, %v705_v39  ;;  %v710_v43 = vrot.slane %v113_v40, %v709_v41  ;;  %v2378_v40 = vld [vmem:[%s3152_s14 + $0x54] ss:$8 sps:$4 sm:$0xff]  }
 0x11e   :  { %v307_v47 = vpack.c.bf16 %v306_v45, %v306_v45 }
 0x120   :  { %2104 = vmatmul.mubr.bf16.vlgmr.msra.gmra.mxu1 %v307_v47  ;;  %2124 = vmatmul.mubr.bf16.vlgmr.msra.gmra.mxu0 %v307_v47 }
 0x121   :  { %2128 = vmatpush3.bf16.msra.mxu1 %v2328_v46  ;;  %2135 = vmatprep.mubr.msk.bf16.mxu1 %vm2508_vm0, %v2507_v0 }
 0x122   :  { %2129 = vmatprep.subr.bf16.mxu1 %v2507_v0  ;;  %750 = vmatpush1.bf16.msra.mxu0 %v2336_v8  ;;  %v2355_v8 = vld [vmem:[%s3151_s13 + $0x18] sm:$0xff]  }
 0x123   :  { %751 = vmatprep.subr.bf16.mxu0 %v2341_v10  ;;  %769 = vmatprep.mubr.bf16.mxu0 %v2509_v12  ;;  %v2357_v10 = vld [vmem:[%s3151_s13 + $0x10] sm:$0xff]  }
 0x125   :  { %2130 = vmatpush3.bf16.msra.mxu1 %v2329_v48 }
 0x126   :  { %2131 = vmatprep.subr.bf16.mxu1 %v2507_v0  ;;  %752 = vmatpush1.bf16.msra.mxu0 %v2339_v11  ;;  %v2358_v11 = vld [vmem:[%s3150_s12 + $0x8] sm:$0xff]  }
 0x127   :  { %2171 = vmatprep.subr.bf16.mxu0 %v2507_v0 }
 0x129   :  { %2132 = vmatpush3.bf16.msra.mxu1 %v2330_v49 }
 0x12a   :  { %2133 = vmatprep.subr.bf16.mxu1 %v2507_v0 }
 0x12d   :  { %2134 = vmatpush3.bf16.msra.mxu1 %v2331_v50 }
 0x12e   :  { %2139 = vmatprep.subr.bf16.mxu1 %v2507_v0 }
 0x1e0   :  { %v412_v52 = vpop.f32.mrf.mxu1  ;;  %v525_v53 = vpop.f32.mrf.mxu0 }
 0x1e1   :  { %v413_v54 = vadd.f32 %v1862_v51, %v412_v52  ;;  %v526_v59 = vadd.f32 %v1871_v55, %v525_v53  ;;  %v127_v52 = vld [vmem:[%s3175_s3] sm:$0xff] }
 0x1e2   :  { %v2105_v56 = vpop.f32.mrf.mxu1  ;;  %v2125_v57 = vpop.f32.mrf.mxu0 }
 0x1e3   :  { %vm418_vm2 = vcmp.ge.f32.partialorder %v413_v54, 0.0  ;;  %v419_v58 = vmul.f32 0.01, %v413_v54  ;;  %v2350_v57 = vld [vmem:[#allocation7 + $0x8] sm:$0xff]  }
 0x1e4   :  { %v415_v60 = vpop.f32.mrf.mxu1  ;;  %v528_v61 = vpop.f32.mrf.mxu0 }
 0x1e5   :  { %v420_v62 = vsel %vm418_vm2, %v413_v54, %v419_v58  ;;  %v2351_v58 = vld [vmem:[#allocation7] sm:$0xff]  }
 0x1e6   :  { %v531_v63 = vadd.f32 %v526_v59, %v420_v62  ;;  %v2106_v1 = vpop.f32.mrf.mxu1  ;;  %v2126_v2 = vpop.f32.mrf.mxu0  ;;  %v2354_v59 = vld [vmem:[%s3150_s12 + $0x18] sm:$0xff]   ;;  %v1897_v60 = vld [vmem:[%s3174_s22 + $0x7] ss:$0 sm:$0xff] }
 0x1e8   :  { %v532_v4 = vpack.c.bf16 %v531_v63, %v531_v63 }
 0x1ea   :  { %2136 = vmatmul.mubr.msk.bf16.vlgmr.msra.gmra.mxu1 %vm571_vm3, %v532_v4 }
 0x1eb   :  { %2140 = vmatpush3.bf16.msra.mxu1 %v2332_v3  ;;  %2147 = vmatprep.mubr.msk.bf16.mxu1 %vm2508_vm0, %v2507_v0 }
 0x1ec   :  { %2141 = vmatprep.subr.bf16.mxu1 %v2507_v0 }
 0x1ef   :  { %2142 = vmatpush3.bf16.msra.mxu1 %v2333_v5 }
 0x1f0   :  { %2143 = vmatprep.subr.bf16.mxu1 %v2507_v0 }
 0x1f3   :  { %2144 = vmatpush3.bf16.msra.mxu1 %v2334_v6 }
 0x1f4   :  { %2145 = vmatprep.subr.bf16.mxu1 %v2507_v0 }
 0x1f7   :  { %2146 = vmatpush3.bf16.msra.mxu1 %v2335_v7  ;;  %v2353_v7 = vld [vmem:[#allocation5] sm:$0xff]  }
 0x1f8   :  { %2151 = vmatprep.subr.bf16.mxu1 %v2507_v0 }
 0x1fa   :  { %2148 = vmatmul.mubr.msk.bf16.vlgmr.msra.gmra.mxu1 %vm571_vm3, %v532_v4  ;;  %v2352_v4 = vld [vmem:[#allocation5 + $0x8] sm:$0xff]  }
 0x1fb   :  { %2167 = vmatprep.mubr.msk.bf16.mxu1 %vm2508_vm0, %v2507_v0  ;;  %2152 = vmatpush3.bf16.msra.mxu1 %v2342_v13  ;;  %v2359_v13 = vld [vmem:[%s3151_s13 + $0x8] sm:$0xff]  }
 0x1fc   :  { %2153 = vmatprep.subr.bf16.mxu1 %v2507_v0 }
 0x1ff   :  { %2154 = vmatpush3.bf16.msra.mxu1 %v2343_v30 }
 0x200   :  { %2155 = vmatprep.subr.bf16.mxu1 %v2507_v0 }
 0x203   :  { %2156 = vmatpush3.bf16.msra.mxu1 %v2344_v31  ;;  %v2362_v31 = vld [vmem:[%s3153_s15 + $0x38] sm:$0xff]  }
 0x204   :  { %2157 = vmatprep.subr.bf16.mxu1 %v2507_v0 }
 0x207   :  { %2158 = vmatpush3.bf16.msra.mxu1 %v2345_v32 }
 0x208   :  { %2159 = vmatprep.subr.bf16.mxu1 %v2507_v0 }
 0x20b   :  { %2160 = vmatpush3.bf16.msra.mxu1 %v2346_v33  ;;  %v2370_v33 = vld [vmem:[%s3152_s14 + $0x70] ss:$8 sps:$4 sm:$0xff]  }
 0x20c   :  { %2161 = vmatprep.subr.bf16.mxu1 %v2507_v0 }
 0x20f   :  { %2162 = vmatpush3.bf16.msra.mxu1 %v2347_v34 }
 0x210   :  { %2163 = vmatprep.subr.bf16.mxu1 %v2507_v0 }
 0x213   :  { %2164 = vmatpush3.bf16.msra.mxu1 %v2348_v35  ;;  %v2375_v35 = vld [vmem:[%s3152_s14 + $0x64] ss:$8 sps:$4 sm:$0xff]  }
 0x214   :  { %2165 = vmatprep.subr.bf16.mxu1 %v2507_v0 }
 0x217   :  { %2166 = vmatpush3.bf16.msra.mxu1 %v2349_v36  ;;  %v2363_v36 = vld [vmem:[%s3153_s15 + $0x30] sm:$0xff]  }
 0x218   :  { %2199 = vmatprep.subr.bf16.mxu1 %v2507_v0 }
 0x2aa   :  { %v609_v14 = vpop.f32.mrf.mxu1 }
 0x2ab   :  { %v610_v19 = vadd.f32 %v1880_v18, %v609_v14  ;;  %v2360_v14 = vld [vmem:[%s3150_s12] sm:$0xff]  }
 0x2ac   :  { %v2137_v15 = vpop.f32.mrf.mxu1 }
 0x2ad   :  { %v616_v20 = vmul.f32 0.01, %v610_v19  ;;  %vm615_vm4 = vcmp.ge.f32.partialorder %v610_v19, 0.0  ;;  %v2361_v15 = vld [vmem:[%s3151_s13] sm:$0xff]  }
 0x2ae   :  { %v612_v16 = vpop.f32.mrf.mxu1 }
 0x2af   :  { %v617_v24 = vsel %vm615_vm4, %v610_v19, %v616_v20  ;;  %v2372_v16 = vld [vmem:[%s3152_s14 + $0x74] ss:$8 sps:$4 sm:$0xff]  }
 0x2b0   :  { %v2138_v17 = vpop.f32.mrf.mxu1 }
 0x2b1   :  { %v1906_v17 = vld [vmem:[%s3174_s22 + $0x9] ss:$0 sm:$0xff] }
 0x2ba   :  { %v690_v22 = vpop.f32.mrf.mxu1 }
 0x2bb   :  { %v691_v23 = vadd.f32 %v1886_v21, %v690_v22 }
 0x2bc   :  { %v2149_v25 = vpop.f32.mrf.mxu1 }
 0x2bd   :  { %v696_v26 = vadd.f32 %v691_v23, %v617_v24  ;;  %v1910_v24 = vld [vmem:[%s3174_s22 + $0x8] ss:$0 sm:$0xff] }
 0x2be   :  { %v693_v27 = vpop.f32.mrf.mxu1 }
 0x2bf   :  { %v697_v28 = vpack.c.bf16 %v696_v26, %v696_v26 }
 0x2c0   :  { %v2150_v29 = vpop.f32.mrf.mxu1 }
 0x2c1   :  { %1896 = vmatmul.mubr.msk.bf16.vlgmr.msra.gmra.mxu0 %vm733_vm5, %v697_v28 }
 0x2c2   :  { %2175 = vmatprep.mubr.msk.bf16.mxu0 %vm2508_vm0, %v2507_v0  ;;  %2172 = vmatpush3.bf16.msra.mxu0 %v2350_v57  ;;  %v2393_v57 = vld [vmem:[%s3152_s14 + $0x4] ss:$8 sps:$4 sm:$0xff]  }
 0x2c3   :  { %2173 = vmatprep.subr.bf16.mxu0 %v2507_v0 }
 0x2c6   :  { %2174 = vmatpush3.bf16.msra.mxu0 %v2351_v58  ;;  %v2395_v58 = vld [vmem:[%s3155_s17 + $0x28] sm:$0xff]  }
 0x2c7   :  { %2179 = vmatprep.subr.bf16.mxu0 %v2507_v0 }
 0x381   :  { %v771_v44 = vpop.f32.mrf.mxu0 }
 0x382   :  { %v772_v45 = vadd.f32 %v771_v44, %v706_v42  ;;  %v2364_v42 = vld [vmem:[%s3153_s15 + $0x28] sm:$0xff]  }
 0x383   :  { %v773_v46 = vpop.f32.mrf.mxu0  ;;  %v2381_v44 = vld [vmem:[%s3152_s14 + $0x44] ss:$8 sps:$4 sm:$0xff]  }
 0x384   :  { %1822 = vst [vmem:[%s3159_s21 + $0x8] sm:$0xff] %v772_v45  ;;  %v774_v47 = vadd.f32 %v773_v46, %v710_v43  ;;  %v2376_v43 = vld [vmem:[%s3152_s14 + $0x50] ss:$8 sps:$4 sm:$0xff]   ;;  %v2384_v46 = vld [vmem:[%s3152_s14 + $0x34] ss:$8 sps:$4 sm:$0xff]  }
 0x385   :  { %v775_v48 = vpop.f32.mrf.mxu0 }
 0x386   :  { %v778_v49 = vmul.f32 0.5, %v774_v47  ;;  %1823 = vst [vmem:[%s3159_s21 + $0x10] sm:$0xff] %v774_v47  ;;  %v2366_v47 = vld [vmem:[%s3153_s15 + $0x18] sm:$0xff]  }
 0x387   :  { %v776_v50 = vpop.f32.mrf.mxu0  ;;  %v2382_v48 = vld [vmem:[%s3152_s14 + $0x30] ss:$8 sps:$4 sm:$0xff]  }
 0x388   :  { %v779_v51 = vmul.f32 1.442695, %v778_v49  ;;  %v2387_v49 = vld [vmem:[%s3152_s14 + $0x24] ss:$8 sps:$4 sm:$0xff]   ;;  %v2367_v50 = vld [vmem:[%s3153_s15 + $0x10] sm:$0xff]  }
 0x38a   :  { %2414 = vpow2.f32 %v779_v51  ;;  %v2385_v51 = vld [vmem:[%s3152_s14 + $0x20] ss:$8 sps:$4 sm:$0xff]  }
 0x397   :  { %v2415_v53 = vpop.eup %2414 }
 0x398   :  { %v781_v54 = vmul.f32 %v2415_v53, %v127_v52  ;;  %v2368_v52 = vld [vmem:[%s3153_s15 + $0x8] sm:$0xff]   ;;  %v2369_v53 = vld [vmem:[%s3153_s15] sm:$0xff]  }
 0x39a   :  { %v782_v55 = vadd.f32 %v781_v54, %v772_v45  ;;  %v2379_v45 = vld [vmem:[%s3152_s14 + $0x40] ss:$8 sps:$4 sm:$0xff]   ;;  %v2390_v54 = vld [vmem:[%s3152_s14 + $0x14] ss:$8 sps:$4 sm:$0xff]  }
 0x39c   :  { %v2871_v56 = vpack.c.bf16 %v782_v55, %v782_v55  ;;  %1824 = vst [vmem:[%s3159_s21 + $0x18] sm:$0xff] %v782_v55  ;;  %v2388_v55 = vld [vmem:[%s3152_s14 + $0x10] ss:$8 sps:$4 sm:$0xff]  }
 0x39e   :  { %2168 = vmatmul.mubr.bf16.vlgmr.msra.gmra.mxu1 %v2871_v56 }
 0x39f   :  { %2207 = vmatprep.mubr.msk.bf16.mxu1 %vm2508_vm0, %v2507_v0  ;;  %2200 = vmatpush3.bf16.msra.mxu1 %v2354_v59  ;;  %v2397_v59 = vld [vmem:[%s3155_s17 + $0x20] sm:$0xff]  }
 0x3a0   :  { %2201 = vmatprep.subr.bf16.mxu1 %v2507_v0 }
 0x3a3   :  { %2202 = vmatpush3.bf16.msra.mxu1 %v2356_v9 }
 0x3a4   :  { %2203 = vmatprep.subr.bf16.mxu1 %v2507_v0 }
 0x3a7   :  { %2204 = vmatpush3.bf16.msra.mxu1 %v2358_v11 }
 0x3a8   :  { %2205 = vmatprep.subr.bf16.mxu1 %v2507_v0 }
 0x3ab   :  { %2206 = vmatpush3.bf16.msra.mxu1 %v2360_v14 }
 0x3ac   :  { %2211 = vmatprep.subr.bf16.mxu1 %v2507_v0 }
 0x45e   :  { %v888_v61 = vpop.f32.mrf.mxu1 }
 0x45f   :  { %v889_v62 = vadd.f32 %v1897_v60, %v888_v61  ;;  %v2399_v60 = vld [vmem:[%s3155_s17 + $0x18] sm:$0xff]   ;;  %v2401_v61 = vld [vmem:[%s3155_s17 + $0x10] sm:$0xff]  }
 0x460   :  { %v2169_v63 = vpop.f32.mrf.mxu1 }
 0x461   :  { %vm894_vm6 = vcmp.ge.f32.partialorder %v889_v62, 0.0  ;;  %v895_v1 = vmul.f32 0.01, %v889_v62  ;;  %v2405_v63 = vld [vmem:[%s3155_s17] sm:$0xff]  }
 0x462   :  { %v891_v2 = vpop.f32.mrf.mxu1 }
 0x463   :  { %v896_v3 = vsel %vm894_vm6, %v889_v62, %v895_v1  ;;  %v2403_v62 = vld [vmem:[%s3155_s17 + $0x8] sm:$0xff]  }
 0x464   :  { %v897_v5 = vpack.c.bf16 %v896_v3, %v896_v3  ;;  %v2170_v6 = vpop.f32.mrf.mxu1  ;;  %v1914_v1 = vld [vmem:[%s3174_s22 + $0xb] ss:$0 sm:$0xff] }
 0x466   :  { %2176 = vmatmul.mubr.msk.bf16.vlgmr.msra.gmra.mxu0 %vm733_vm5, %v897_v5 }
 0x467   :  { %2180 = vmatpush3.bf16.msra.mxu0 %v2352_v4  ;;  %2183 = vmatprep.mubr.msk.bf16.mxu0 %vm2508_vm0, %v2507_v0 }
 0x468   :  { %2181 = vmatprep.subr.bf16.mxu0 %v2507_v0 }
 0x46b   :  { %2182 = vmatpush3.bf16.msra.mxu0 %v2353_v7 }
 0x46c   :  { %2187 = vmatprep.subr.bf16.mxu0 %v2507_v0 }
 0x46e   :  { %2184 = vmatmul.mubr.msk.bf16.vlgmr.msra.gmra.mxu0 %vm733_vm5, %v897_v5  ;;  %v1920_v5 = vld [vmem:[%s3174_s22 + $0xa] ss:$0 sm:$0xff] }
 0x46f   :  { %2195 = vmatprep.mubr.msk.bf16.mxu0 %vm2508_vm0, %v2507_v0  ;;  %2188 = vmatpush3.bf16.msra.mxu0 %v2355_v8 }
 0x470   :  { %2189 = vmatprep.subr.bf16.mxu0 %v2507_v0 }
 0x473   :  { %2190 = vmatpush3.bf16.msra.mxu0 %v2357_v10 }
 0x474   :  { %2191 = vmatprep.subr.bf16.mxu0 %v2507_v0 }
 0x477   :  { %2192 = vmatpush3.bf16.msra.mxu0 %v2359_v13 }
 0x478   :  { %2193 = vmatprep.subr.bf16.mxu0 %v2507_v0 }
 0x47b   :  { %2194 = vmatpush3.bf16.msra.mxu0 %v2361_v15 }
 0x47c   :  { %1301 = vmatprep.subr.bf16.mxu0 %v2372_v16 }
 0x526   :  { %v957_v18 = vpop.f32.mrf.mxu0 }
 0x527   :  { %v958_v19 = vadd.f32 %v1906_v17, %v957_v18  ;;  %v2394_v17 = vld [vmem:[%s3154_s16 + $0x28] sm:$0xff]  }
 0x528   :  { %v2177_v20 = vpop.f32.mrf.mxu0 }
 0x529   :  { %v964_v22 = vmul.f32 0.01, %v958_v19  ;;  %vm963_vm7 = vcmp.ge.f32.partialorder %v958_v19, 0.0  ;;  %v2398_v20 = vld [vmem:[%s3154_s16 + $0x18] sm:$0xff]  }
 0x52a   :  { %v960_v21 = vpop.f32.mrf.mxu0 }
 0x52b   :  { %v965_v27 = vsel %vm963_vm7, %v958_v19, %v964_v22  ;;  %v2396_v19 = vld [vmem:[%s3154_s16 + $0x20] sm:$0xff]   ;;  %v2400_v21 = vld [vmem:[%s3154_s16 + $0x10] sm:$0xff]   ;;  %v2402_v22 = vld [vmem:[%s3154_s16 + $0x8] sm:$0xff]  }
 0x52c   :  { %v2178_v23 = vpop.f32.mrf.mxu0 }
 0x52d   :  { %v2404_v23 = vld [vmem:[%s3154_s16] sm:$0xff]  }
 0x52e   :  { %v1022_v25 = vpop.f32.mrf.mxu0 }
 0x52f   :  { %v1023_v26 = vadd.f32 %v1910_v24, %v1022_v25  ;;  %v1942_v24 = vld [vmem:[%s3174_s22 + $0xe] ss:$0 sm:$0xff] }
 0x530   :  { %v2185_v28 = vpop.f32.mrf.mxu0 }
 0x531   :  { %v1028_v29 = vadd.f32 %v1023_v26, %v965_v27 }
 0x532   :  { %v1025_v30 = vpop.f32.mrf.mxu0 }
 0x533   :  { %v1029_v32 = vpack.c.bf16 %v1028_v29, %v1028_v29 }
 0x534   :  { %v2186_v34 = vpop.f32.mrf.mxu0 }
 0x535   :  { %2196 = vmatmul.mubr.msk.bf16.vlgmr.msra.gmra.mxu0 %vm571_vm3, %v1029_v32  ;;  %2208 = vmatmul.mubr.msk.bf16.vlgmr.msra.gmra.mxu1 %vm571_vm3, %v1029_v32  ;;  %v2407_v34 = vld [vmem:[%s3156_s18 + $0x10] sm:$0xff]  }
 0x536   :  { %2212 = vmatpush3.bf16.msra.mxu1 %v2362_v31  ;;  %2227 = vmatprep.mubr.msk.bf16.mxu1 %vm2508_vm0, %v2507_v0 }
 0x537   :  { %2213 = vmatprep.subr.bf16.mxu1 %v2507_v0  ;;  %1302 = vmatpush1.bf16.msra.mxu0 %v2370_v33  ;;  %v2406_v33 = vld [vmem:[%s3156_s18 + $0x18] sm:$0xff]  }
 0x538   :  { %1303 = vmatprep.subr.bf16.mxu0 %v2375_v35  ;;  %1333 = vmatprep.mubr.bf16.mxu0 %v2509_v12  ;;  %v2365_v12 = vld [vmem:[%s3153_s15 + $0x20] sm:$0xff]   ;;  %v2408_v35 = vld [vmem:[%s3156_s18 + $0x8] sm:$0xff]  }
 0x53a   :  { %2214 = vmatpush3.bf16.msra.mxu1 %v2363_v36  ;;  %v2409_v36 = vld [vmem:[%s3156_s18] sm:$0xff]  }
 0x53b   :  { %2215 = vmatprep.subr.bf16.mxu1 %v2507_v0  ;;  %1304 = vmatpush1.bf16.msra.mxu0 %v2373_v37  ;;  %v2410_v37 = vld [vmem:[%s3157_s19 + $0x18] sm:$0xff]  }
 0x53c   :  { %1305 = vmatprep.subr.bf16.mxu0 %v2378_v40  ;;  %v2411_v40 = vld [vmem:[%s3157_s19 + $0x10] sm:$0xff]  }
 0x53e   :  { %2216 = vmatpush3.bf16.msra.mxu1 %v2364_v42  ;;  %v119_v42 = vld [vmem:[%s3174_s22 + $0xc] sm:$0x3] }
 0x53f   :  { %2217 = vmatprep.subr.bf16.mxu1 %v2507_v0  ;;  %1306 = vmatpush1.bf16.msra.mxu0 %v2376_v43  ;;  %v1214_v43 = vrot.slane %v119_v42, %v705_v39 }
 0x540   :  { %1307 = vmatprep.subr.bf16.mxu0 %v2381_v44  ;;  %v1218_v44 = vrot.slane %v119_v42, %v709_v41 }
 0x542   :  { %2218 = vmatpush3.bf16.msra.mxu1 %v2365_v12 }
 0x543   :  { %2219 = vmatprep.subr.bf16.mxu1 %v2507_v0  ;;  %1308 = vmatpush1.bf16.msra.mxu0 %v2379_v45 }
 0x544   :  { %1309 = vmatprep.subr.bf16.mxu0 %v2384_v46 }
 0x546   :  { %2220 = vmatpush3.bf16.msra.mxu1 %v2366_v47 }
 0x547   :  { %2221 = vmatprep.subr.bf16.mxu1 %v2507_v0  ;;  %1310 = vmatpush1.bf16.msra.mxu0 %v2382_v48 }
 0x548   :  { %1311 = vmatprep.subr.bf16.mxu0 %v2387_v49 }
 0x54a   :  { %2222 = vmatpush3.bf16.msra.mxu1 %v2367_v50  ;;  %v1959_v50 = vld [vmem:[%s3174_s22 + $0x10] ss:$0 sm:$0xff] }
 0x54b   :  { %2223 = vmatprep.subr.bf16.mxu1 %v2507_v0  ;;  %1312 = vmatpush1.bf16.msra.mxu0 %v2385_v51 }
 0x54c   :  { %1313 = vmatprep.subr.bf16.mxu0 %v2390_v54 }
 0x54e   :  { %2224 = vmatpush3.bf16.msra.mxu1 %v2368_v52 }
 0x54f   :  { %2225 = vmatprep.subr.bf16.mxu1 %v2507_v0  ;;  %1314 = vmatpush1.bf16.msra.mxu0 %v2388_v55 }
 0x550   :  { %1315 = vmatprep.subr.bf16.mxu0 %v2393_v57 }
 0x552   :  { %2226 = vmatpush3.bf16.msra.mxu1 %v2369_v53 }
 0x553   :  { %2247 = vmatprep.subr.bf16.mxu1 %v2507_v0 }
 0x555   :  { %2228 = vmatmul.mubr.bf16.vlgmr.msra.gmra.mxu1 %v2871_v56  ;;  %v2391_v56 = vld [vmem:[%s3152_s14] ss:$8 sps:$4 sm:$0xff]  }
 0x556   :  { %2259 = vmatprep.mubr.msk.bf16.mxu1 %vm2508_vm0, %v2507_v0  ;;  %1316 = vmatpush1.bf16.msra.mxu0 %v2391_v56 }
 0x557   :  { %2231 = vmatprep.subr.bf16.mxu0 %v2507_v0  ;;  %2248 = vmatpush3.bf16.msra.mxu1 %v2395_v58 }
 0x558   :  { %2249 = vmatprep.subr.bf16.mxu1 %v2507_v0 }
 0x55b   :  { %2250 = vmatpush3.bf16.msra.mxu1 %v2397_v59 }
 0x55c   :  { %2251 = vmatprep.subr.bf16.mxu1 %v2507_v0 }
 0x55f   :  { %2252 = vmatpush3.bf16.msra.mxu1 %v2399_v60  ;;  %v2412_v60 = vld [vmem:[%s3157_s19 + $0x8] sm:$0xff]  }
 0x560   :  { %2253 = vmatprep.subr.bf16.mxu1 %v2507_v0 }
 0x563   :  { %2254 = vmatpush3.bf16.msra.mxu1 %v2401_v61  ;;  %v2413_v61 = vld [vmem:[%s3157_s19] sm:$0xff]   ;;  %s2510_s19 = smov [#allocation8]  }
 0x564   :  { %2255 = vmatprep.subr.bf16.mxu1 %v2507_v0  ;;  %s1831_s2 = sshll.u32 %s2510_s19, 4  ;;  %s1832_s2 = int_to_ptr.vmem [resolvable:$true] %s1831_s2 }
 0x565   :  { %s2476_s10 = scalar_lea.vmem %s1832_s2, 256  ;;  %p2481_p2 = scmp.lt.s32.totalorder %s1832_s2, %s1832_s2 }
 0x566   :  { %p2477_p1 = scmp.ne.s32.totalorder %s1832_s2, %s2476_s10  ;;  %p2482_p3 = scmp.lt.s32.totalorder %s2476_s10, %s2476_s10 }
 0x567   :  { %2256 = vmatpush3.bf16.msra.mxu1 %v2403_v62  ;;  %v1967_v62 = vld [vmem:[%s3174_s22 + $0x11] ss:$0 sm:$0xff] }
 0x568   :  { %2257 = vmatprep.subr.bf16.mxu1 %v2507_v0  ;;  %p2483_p4 = por %p2482_p3, %p2481_p2 }
 0x56a   :  { %p2484_p5 = pnand %p2483_p4, %p2477_p1 }
 0x56b   :  { %2258 = vmatpush3.bf16.msra.mxu1 %v2405_v63 }
 0x56c   :  { %2275 = vmatprep.subr.bf16.mxu1 %v2507_v0 }
 0x5f5   :  { %v1105_v2 = vpop.f32.mrf.mxu0  ;;  %v1186_v3 = vpop.f32.mrf.mxu1 }
 0x5f6   :  { %v1106_v4 = vadd.f32 %v1914_v1, %v1105_v2  ;;  %v1187_v9 = vadd.f32 %v1920_v5, %v1186_v3  ;;  %v1951_v1 = vld [vmem:[%s3174_s22 + $0xf] ss:$0 sm:$0xff] }
 0x5f7   :  { %v2197_v6 = vpop.f32.mrf.mxu0  ;;  %v2209_v7 = vpop.f32.mrf.mxu1 }
 0x5f8   :  { %vm1111_vm8 = vcmp.ge.f32.partialorder %v1106_v4, 0.0  ;;  %v1112_v8 = vmul.f32 0.01, %v1106_v4 }
 0x5f9   :  { %v1108_v10 = vpop.f32.mrf.mxu0  ;;  %v1189_v11 = vpop.f32.mrf.mxu1 }
 0x5fa   :  { %v1113_v13 = vsel %vm1111_vm8, %v1106_v4, %v1112_v8 }
 0x5fb   :  { %v1192_v14 = vadd.f32 %v1187_v9, %v1113_v13  ;;  %v2198_v15 = vpop.f32.mrf.mxu0  ;;  %v2210_v16 = vpop.f32.mrf.mxu1 }
 0x5fd   :  { %v1193_v18 = vpack.c.bf16 %v1192_v14, %v1192_v14 }
 0x5ff   :  { %1334 = vmatmul.mubr.bf16.vlgmr.msra.gmra.mxu0 %v1193_v18 }
 0x600   :  { %2232 = vmatpush3.bf16.msra.mxu0 %v2394_v17  ;;  %2243 = vmatprep.mubr.msk.bf16.mxu0 %vm2508_vm0, %v2507_v0 }
 0x601   :  { %2233 = vmatprep.subr.bf16.mxu0 %v2507_v0 }
 0x604   :  { %2234 = vmatpush3.bf16.msra.mxu0 %v2396_v19 }
 0x605   :  { %2235 = vmatprep.subr.bf16.mxu0 %v2507_v0 }
 0x608   :  { %2236 = vmatpush3.bf16.msra.mxu0 %v2398_v20 }
 0x609   :  { %2237 = vmatprep.subr.bf16.mxu0 %v2507_v0 }
 0x60c   :  { %2238 = vmatpush3.bf16.msra.mxu0 %v2400_v21 }
 0x60d   :  { %2239 = vmatprep.subr.bf16.mxu0 %v2507_v0 }
 0x610   :  { %2240 = vmatpush3.bf16.msra.mxu0 %v2402_v22 }
 0x611   :  { %2241 = vmatprep.subr.bf16.mxu0 %v2507_v0 }
 0x614   :  { %2242 = vmatpush3.bf16.msra.mxu0 %v2404_v23 }
 0x615   :  { %v1446_v25 = vpop.f32.mrf.mxu1  ;;  %2263 = vmatprep.subr.bf16.mxu0 %v2507_v0 }
 0x616   :  { %v1447_v26 = vadd.f32 %v1942_v24, %v1446_v25 }
 0x617   :  { %v2229_v27 = vpop.f32.mrf.mxu1 }
 0x618   :  { %vm1452_vm9 = vcmp.ge.f32.partialorder %v1447_v26, 0.0  ;;  %v1453_v28 = vmul.f32 0.01, %v1447_v26 }
 0x619   :  { %v1449_v29 = vpop.f32.mrf.mxu1 }
 0x61a   :  { %v1454_v30 = vsel %vm1452_vm9, %v1447_v26, %v1453_v28 }
 0x61b   :  { %v1455_v31 = vpack.c.bf16 %v1454_v30, %v1454_v30  ;;  %v2230_v32 = vpop.f32.mrf.mxu1 }
 0x61d   :  { %2244 = vmatmul.mubr.msk.bf16.vlgmr.msra.gmra.mxu0 %vm1510_vm10, %v1455_v31  ;;  %2260 = vmatmul.mubr.msk.bf16.vlgmr.msra.gmra.mxu1 %vm1510_vm10, %v1455_v31 }
 0x61e   :  { %2271 = vmatprep.mubr.msk.bf16.mxu0 %vm2508_vm0, %v2507_v0  ;;  %2283 = vmatprep.mubr.msk.bf16.mxu1 %vm2508_vm0, %v2507_v0 }
 0x61f   :  { %2264 = vmatpush3.bf16.msra.mxu0 %v2406_v33  ;;  %2276 = vmatpush3.bf16.msra.mxu1 %v2410_v37 }
 0x620   :  { %2265 = vmatprep.subr.bf16.mxu0 %v2507_v0  ;;  %2277 = vmatprep.subr.bf16.mxu1 %v2507_v0 }
 0x623   :  { %2266 = vmatpush3.bf16.msra.mxu0 %v2407_v34  ;;  %2278 = vmatpush3.bf16.msra.mxu1 %v2411_v40 }
 0x624   :  { %2267 = vmatprep.subr.bf16.mxu0 %v2507_v0  ;;  %2279 = vmatprep.subr.bf16.mxu1 %v2507_v0 }
 0x627   :  { %2268 = vmatpush3.bf16.msra.mxu0 %v2408_v35  ;;  %2280 = vmatpush3.bf16.msra.mxu1 %v2412_v60 }
 0x628   :  { %2269 = vmatprep.subr.bf16.mxu0 %v2507_v0  ;;  %2281 = vmatprep.subr.bf16.mxu1 %v2507_v0 }
 0x62b   :  { %2270 = vmatpush3.bf16.msra.mxu0 %v2409_v36  ;;  %2282 = vmatpush3.bf16.msra.mxu1 %v2413_v61 }
 0x6bf   :  { %v1335_v12 = vpop.f32.mrf.mxu0 }
 0x6c0   :  { %v1336_v45 = vadd.f32 %v1335_v12, %v1214_v43 }
 0x6c1   :  { %v1337_v46 = vpop.f32.mrf.mxu0 }
 0x6c2   :  { %1819 = vst [vmem:[#allocation8] sm:$0xff] %v1336_v45  ;;  %v1338_v47 = vadd.f32 %v1337_v46, %v1218_v44 }
 0x6c3   :  { %v1339_v48 = vpop.f32.mrf.mxu0 }
 0x6c4   :  { %1820 = vst [vmem:[#allocation8 + $0x8] sm:$0xff] %v1338_v47 }
 0x6c5   :  { %v1340_v49 = vpop.f32.mrf.mxu0 }
 0x6dd   :  { %v1548_v51 = vpop.f32.mrf.mxu0  ;;  %v1642_v52 = vpop.f32.mrf.mxu1 }
 0x6de   :  { %v1643_v53 = vadd.f32 %v1959_v50, %v1642_v52  ;;  %v1549_v5 = vadd.f32 %v1951_v1, %v1548_v51 }
 0x6df   :  { %v2245_v54 = vpop.f32.mrf.mxu0  ;;  %v2261_v39 = vpop.f32.mrf.mxu1 }
 0x6e0   :  { %vm1648_vm11 = vcmp.ge.f32.partialorder %v1643_v53, 0.0  ;;  %v1649_v38 = vmul.f32 0.01, %v1643_v53 }
 0x6e1   :  { %v1551_v41 = vpop.f32.mrf.mxu0  ;;  %v1645_v55 = vpop.f32.mrf.mxu1 }
 0x6e2   :  { %v1650_v57 = vsel %vm1648_vm11, %v1643_v53, %v1649_v38 }
 0x6e3   :  { %v1651_v56 = vpack.c.bf16 %v1650_v57, %v1650_v57  ;;  %v2246_v58 = vpop.f32.mrf.mxu0  ;;  %v2262_v59 = vpop.f32.mrf.mxu1 }
 0x6e5   :  { %2272 = vmatmul.mubr.msk.bf16.vlgmr.msra.gmra.mxu0 %vm571_vm3, %v1651_v56 }
 0x7a5   :  { %v1727_v63 = vpop.f32.mrf.mxu0 }
 0x7a6   :  { %v1728_v2 = vadd.f32 %v1967_v62, %v1727_v63 }
 0x7a7   :  { %v2273_v3 = vpop.f32.mrf.mxu0 }
 0x7a8   :  { %vm1733_vm12 = vcmp.ge.f32.partialorder %v1728_v2, 0.0  ;;  %v1734_v4 = vmul.f32 0.01, %v1728_v2 }
 0x7a9   :  { %v1730_v0 = vpop.f32.mrf.mxu0 }
 0x7aa   :  { %v1735_v6 = vsel %vm1733_vm12, %v1728_v2, %v1734_v4 }
 0x7ab   :  { %v1736_v7 = vadd.f32 %v1735_v6, %v1549_v5  ;;  %v2274_v8 = vpop.f32.mrf.mxu0 }
 0x7ad   :  { %v1737_v9 = vpack.c.bf16 %v1736_v7, %v1736_v7 }
 0x7af   :  { %2284 = vmatmul.mubr.msk.bf16.vlgmr.msra.gmra.mxu1 %vm571_vm3, %v1737_v9 }
 0x7b0   :  { %2487 = shalt.err (!%p2484_p5)
}
 0x7b1   :  { %1834 = dma.vmem_to_hbm [thread:$0]  %s1832_s2, 256, %s3158_s20, [#allocation4]   ;;  %v1973_v10 = vld [vmem:[%s3174_s22 + $0x12] ss:$0 sm:$0xff] }
 0x86f   :  { %v1813_v11 = vpop.f32.mrf.mxu1 }
 0x870   :  { %v1814_v13 = vadd.f32 %v1973_v10, %v1813_v11 }
 0x871   :  { %v2285_v14 = vpop.f32.mrf.mxu1 }
 0x872   :  { %1821 = vst [vmem:[%s3159_s21] sm:$0xff] %v1814_v13 }
 0x873   :  { %v1816_v15 = vpop.f32.mrf.mxu1 }
 0x875   :  { %v2286_v16 = vpop.f32.mrf.mxu1 }
 0x876   :  { %2500 = dma.done.wait [#allocation4], 256  }
 0x877   :  { %2501 = vsyncadd [#allocation4], 4294967040 }
 0x878   :  { %1842 = vsyncpa [#allocation3], 1 }
 0x879   :  { %1843 = vsyncpa [#allocation6], 1 }
 0x87a   :  { %1844 = vsyncpa [#allocation4], 1 }

</bundles_post_ra>
